<compile_context>
chip_gen: v7x
topology: tpu7x:2x2x1
jax: 0.10.0
libtpu: 0.0.40
codegen_flags: <defaults>
</compile_context>

<pallas_src>
import functools
import math

import numpy as np
import jax
import jax.numpy as jnp
from jax.experimental import pallas as pl
from jax.experimental.pallas import tpu as pltpu


# ---------------------------------------------------------------------------
# Fused kernel: 2-layer LSTM + FC, one batch-block x one time-chunk per grid step
# ---------------------------------------------------------------------------
def _fused_lstm2_fc_kernel(
    x_ref,        # (TT, BB, Din)  time-major input chunk (matmul dtype)
    wih1_ref,     # (Din, 4H)      layer-1 input weights^T (matmul dtype)
    b1_ref,       # (1, 4H)        layer-1 combined bias (f32)
    wbig_ref,     # (2H, 8H)       [[W_hh1, W_ih2],[0, W_hh2]] (matmul dtype)
    b2_ref,       # (1, 4H)        layer-2 combined bias (f32)
    wfc_ref,      # (H, O)         FC weight^T (matmul dtype)
    bfc_ref,      # (1, O)         FC bias (f32)
    out_ref,      # (TT, BB, O)    time-major output chunk (f32)
    r1_scr,       # (BB, 4H)  carried h1_{t-1} @ W_hh1 across chunks
    c1_scr,       # (BB, H)   layer-1 cell state
    h2_scr,       # (BB, H)   layer-2 hidden state
    c2_scr,       # (BB, H)   layer-2 cell state
    xg_scr,       # (TT, BB, 4H)  precomputed layer-1 input gates (time-major)
    h2buf_scr,    # (TT, BB, H)   layer-2 hidden states for the chunk (time-major)
    *,
    hidden_dim,
    time_chunk,
    matmul_dtype,
):
    H = hidden_dim
    TT = time_chunk
    BB = x_ref.shape[1]
    Din = x_ref.shape[2]
    O = out_ref.shape[2]

    chunk = pl.program_id(1)

    # Reset the recurrent state at the start of every sequence (time chunk 0).
    @pl.when(chunk == 0)
    def _():
        r1_scr[...] = jnp.zeros_like(r1_scr)
        c1_scr[...] = jnp.zeros_like(c1_scr)
        h2_scr[...] = jnp.zeros_like(h2_scr)
        c2_scr[...] = jnp.zeros_like(c2_scr)

    # ---- Hoisted GEMM: layer-1 input projection (+ bias) for ALL timesteps of this
    # chunk, written time-major so the recurrent loop does whole-tile leading-axis loads.
    x_flat = x_ref[...].reshape(TT * BB, Din)
    xg = jnp.dot(x_flat, wih1_ref[...], preferred_element_type=jnp.float32) + b1_ref[...]
    xg_scr[...] = xg.reshape(TT, BB, 4 * H)

    # Hoisted out of the recurrent loop (JAX does not CSE broadcast_in_dim).
    wbig = wbig_ref[...]
    b2b = jnp.broadcast_to(b2_ref[...], (BB, 4 * H))

    def sigm(v):
        # sigmoid via tanh: 1 EUP op + 2 VPU ops (the single EUP slot is the scarce one).
        return 0.5 * jnp.tanh(0.5 * v) + 0.5

    def cell(gates, c_prev):
        # PyTorch gate order [i, f, g, o].
        i_g = sigm(gates[:, 0 * H:1 * H])
        f_g = sigm(gates[:, 1 * H:2 * H])
        g_g = jnp.tanh(gates[:, 2 * H:3 * H])
        o_g = sigm(gates[:, 3 * H:4 * H])
        c_new = f_g * c_prev + i_g * g_g
        h_new = o_g * jnp.tanh(c_new)
        return h_new, c_new

    def step(t, carry):
        r1, c1, h2, c2 = carry
        # Layer 1 @ t: gates = x_t@W_ih1 + b1 (precomputed) + h1_{t-1}@W_hh1 (= r1).
        h1n, c1n = cell(xg_scr[t] + r1, c1)
        # ONE fused GEMM (pipeline skew):
        #   [h1_t, h2_{t-1}] @ [[W_hh1, W_ih2],[0, W_hh2]]
        #     -> [ h1_t@W_hh1 | h1_t@W_ih2 + h2_{t-1}@W_hh2 ]
        #        = layer-1 recurrent gates for t+1 | layer-2 gates for t
        z = jnp.concatenate([h1n, h2], axis=1).astype(matmul_dtype)     # (BB, 2H)
        big = jnp.dot(z, wbig, preferred_element_type=jnp.float32)      # (BB, 8H)
        r1n = big[:, :4 * H]
        h2n, c2n = cell(big[:, 4 * H:] + b2b, c2)
        h2buf_scr[t] = h2n        # whole-tile leading-axis store (time-major buffer)
        return r1n, c1n, h2n, c2n

    carry = (r1_scr[...], c1_scr[...], h2_scr[...], c2_scr[...])
    if TT <= 32:
        # Full static unroll: static indices, best LLO scheduling for small chunks.
        for t in range(TT):
            carry = step(t, carry)
    else:
        carry = jax.lax.fori_loop(0, TT, step, carry, unroll=8)
    r1_scr[...], c1_scr[...], h2_scr[...], c2_scr[...] = carry

    # ---- Fused FC epilogue: one GEMM over the whole chunk (dropout = identity, eval).
    h_flat = h2buf_scr[...].reshape(TT * BB, H).astype(matmul_dtype)
    y = jnp.dot(h_flat, wfc_ref[...], preferred_element_type=jnp.float32) + bfc_ref[...]
    out_ref[...] = y.reshape(TT, BB, O).astype(out_ref.dtype)


# ---------------------------------------------------------------------------
# Tile sizing against per-generation VMEM
# ---------------------------------------------------------------------------
def _divisors(n):
    return [d for d in range(1, n + 1) if n % d == 0]


def _vmem_capacity_bytes():
    try:
        info = pltpu.get_tpu_info()
        return int(getattr(info, "vmem_capacity_bytes", 64 * 1024 * 1024))
    except Exception:
        return 64 * 1024 * 1024   # v7x per-TC size: safe lower bound on every generation


def _vmem_estimate_bytes(BB, TT, Din, H, O, act_bytes):
    f32 = 4
    scratch = f32 * (BB * 4 * H + 3 * BB * H + TT * BB * 4 * H + TT * BB * H)
    io_blocks = 2 * TT * BB * Din * act_bytes + 2 * TT * BB * O * f32   # double-buffered
    weights = 2 * act_bytes * (Din * 4 * H + 2 * H * 8 * H + H * O)
    biases = 2 * f32 * (4 * H + 4 * H + O)
    return scratch + io_blocks + weights + biases


def _pick_tiles(B, T, Din, H, O, act_bytes, budget_bytes):
    # Batch block = MXU "M" dim: largest divisor of B (multiple of 8 unless it equals B,
    # so the (8,128) sublane rule holds when B is split), capped at 256 rows.
    bb_cands = [d for d in _divisors(B) if (d == B or d % 8 == 0)]
    pref = [d for d in bb_cands if d <= 256]
    if B >= 16:
        halved = [d for d in pref if d <= B // 2]   # keep nb >= 2 (v7x 2 TCs / megacore)
        if halved:
            pref = halved
    bb = max(pref) if pref else min(bb_cands)

    # Time chunk: largest divisor of T whose chunk scratch fits the VMEM budget
    # (no divisibility-by-8 requirement: TT is a leading, non-tiled block dim).
    tt = 1
    for d in sorted(_divisors(T)):
        if _vmem_estimate_bytes(bb, d, Din, H, O, act_bytes) <= budget_bytes:
            tt = d
    # If even TT=1 does not fit, shrink the batch block too.
    while bb > 8 and _vmem_estimate_bytes(bb, tt, Din, H, O, act_bytes) > budget_bytes:
        smaller = [d for d in _divisors(B) if d % 8 == 0 and d < bb]
        if not smaller:
            break
        bb = max(smaller)
    return bb, tt


# ---------------------------------------------------------------------------
# Wrapper
# ---------------------------------------------------------------------------
def _pack_params(p, matmul_dtype):
    """Build kernel-ready weights: bf16 pre-cast + fused W_big = [[W_hh1,W_ih2],[0,W_hh2]]."""
    H = p["w_hh0_t"].shape[0]
    zeros = jnp.zeros((H, 4 * H), jnp.float32)
    w_big = jnp.concatenate(
        [jnp.concatenate([p["w_hh0_t"], p["w_ih1_t"]], axis=1),
         jnp.concatenate([zeros, p["w_hh1_t"]], axis=1)],
        axis=0)                                                     # (2H, 8H)
    return dict(
        w_ih1=p["w_ih0_t"].astype(matmul_dtype),
        b1=p["b0"],
        w_big=w_big.astype(matmul_dtype),
        b2=p["b1"],
        w_fc=p["w_fc_t"].astype(matmul_dtype),
        b_fc=p["b_fc"],
    )


@functools.partial(jax.jit, static_argnames=("matmul_dtype",))
def lstm_rnn_forward(params, x_btd, *, matmul_dtype=jnp.bfloat16):
    """x_btd: (B, T, D_in) batch_first -> (B*T, output_dim), matching eval-mode
    fc(dropout(lstm(x)[0].view(-1, H))) with zero-initialized hidden state."""
    B, T, Din = x_btd.shape
    H = params["w_hh0_t"].shape[0]
    O = params["w_fc_t"].shape[1]

    phys_vmem = _vmem_capacity_bytes()
    act_bytes = int(np.dtype(matmul_dtype).itemsize)
    BB, TT = _pick_tiles(B, T, Din, H, O, act_bytes,
                         budget_bytes=int(phys_vmem * 0.45))
    nb, nc = B // BB, T // TT

    kp = _pack_params(params, matmul_dtype)
    # Time-major input: per-step scratch access in the kernel becomes a whole-tile
    # leading-axis index; one cheap XLA transpose here instead of TT strided slices
    # per chunk on the serial critical path.
    x_tbd = jnp.transpose(x_btd, (1, 0, 2)).astype(matmul_dtype)

    kern = functools.partial(_fused_lstm2_fc_kernel,
                             hidden_dim=H, time_chunk=TT, matmul_dtype=matmul_dtype)

    out_tbo = pl.pallas_call(
        kern,
        out_shape=jax.ShapeDtypeStruct((T, B, O), jnp.float32),
        grid_spec=pltpu.PrefetchScalarGridSpec(
            num_scalar_prefetch=0,
            grid=(nb, nc),
            in_specs=[
                pl.BlockSpec((TT, BB, Din), lambda b, c: (c, b, 0)),   # x (time-major)
                pl.BlockSpec((Din, 4 * H), lambda b, c: (0, 0)),       # W_ih1^T
                pl.BlockSpec((1, 4 * H), lambda b, c: (0, 0)),         # b1
                pl.BlockSpec((2 * H, 8 * H), lambda b, c: (0, 0)),     # W_big
                pl.BlockSpec((1, 4 * H), lambda b, c: (0, 0)),         # b2
                pl.BlockSpec((H, O), lambda b, c: (0, 0)),             # W_fc^T
                pl.BlockSpec((1, O), lambda b, c: (0, 0)),             # b_fc
            ],
            out_specs=pl.BlockSpec((TT, BB, O), lambda b, c: (c, b, 0)),
            scratch_shapes=[
                pltpu.VMEM((BB, 4 * H), jnp.float32),       # r1 = h1 @ W_hh1 carry
                pltpu.VMEM((BB, H), jnp.float32),           # c1
                pltpu.VMEM((BB, H), jnp.float32),           # h2
                pltpu.VMEM((BB, H), jnp.float32),           # c2
                pltpu.VMEM((TT, BB, 4 * H), jnp.float32),   # chunk layer-1 input gates
                pltpu.VMEM((TT, BB, H), jnp.float32),       # chunk layer-2 hidden states
            ],
        ),
        compiler_params=pltpu.CompilerParams(
            # Batch blocks are independent ("parallel": megacore / v7x 2-TC sharding);
            # the time axis carries the recurrence through scratch and MUST stay
            # "arbitrary" (ascending iteration order).
            dimension_semantics=("parallel", "arbitrary"),
            vmem_limit_bytes=int(phys_vmem * 0.75),
        ),
    )(x_tbd, kp["w_ih1"], kp["b1"], kp["w_big"], kp["b2"], kp["w_fc"], kp["b_fc"])

    # Time-major -> PyTorch batch_first r_out.view(-1, H) row order (row = b*T + t).
    return jnp.transpose(out_tbo, (1, 0, 2)).reshape(B * T, O)


# ---------------------------------------------------------------------------
# Parameter init (mirrors nn.LSTM / nn.Linear, n_layers == 2), kept in f32
# ---------------------------------------------------------------------------
def init_params(key, input_dim, hidden_dim, output_dim):
    H = hidden_dim
    k = 1.0 / math.sqrt(H)
    ks = jax.random.split(key, 10)
    u = lambda kk, shape: jax.random.uniform(kk, shape, jnp.float32, -k, k)
    w_ih0 = u(ks[0], (4 * H, input_dim)); w_hh0 = u(ks[1], (4 * H, H))
    b_ih0 = u(ks[2], (4 * H,));           b_hh0 = u(ks[3], (4 * H,))
    w_ih1 = u(ks[4], (4 * H, H));         w_hh1 = u(ks[5], (4 * H, H))
    b_ih1 = u(ks[6], (4 * H,));           b_hh1 = u(ks[7], (4 * H,))
    w_fc = u(ks[8], (output_dim, H));     b_fc = u(ks[9], (output_dim,))
    return dict(
        w_ih0_t=w_ih0.T,                                   # (Din, 4H)
        w_hh0_t=w_hh0.T,                                   # (H, 4H)
        b0=(b_ih0 + b_hh0).reshape(1, 4 * H),
        w_ih1_t=w_ih1.T,                                   # (H, 4H)
        w_hh1_t=w_hh1.T,                                   # (H, 4H)
        b1=(b_ih1 + b_hh1).reshape(1, 4 * H),
        w_fc_t=w_fc.T,                                     # (H, O)
        b_fc=b_fc.reshape(1, output_dim),
    )


# ---------------------------------------------------------------------------
# Pure-JAX f32 reference (eval-mode PyTorch semantics)
# ---------------------------------------------------------------------------
def _lstm_layer_ref(x_tbd, w_ih_t, w_hh_t, b, H):
    B = x_tbd.shape[1]

    def step(carry, x_t):
        h, c = carry
        g = (jnp.dot(x_t, w_ih_t, precision="highest")
             + jnp.dot(h, w_hh_t, precision="highest") + b)
        i = jax.nn.sigmoid(g[:, :H])
        f = jax.nn.sigmoid(g[:, H:2 * H])
        gg = jnp.tanh(g[:, 2 * H:3 * H])
        o = jax.nn.sigmoid(g[:, 3 * H:])
        c = f * c + i * gg
        h = o * jnp.tanh(c)
        return (h, c), h

    init = (jnp.zeros((B, H), jnp.float32), jnp.zeros((B, H), jnp.float32))
    _, hs = jax.lax.scan(step, init, x_tbd)
    return hs  # (T, B, H)


def reference_forward(params, x_btd):
    H = params["w_hh0_t"].shape[0]
    x_tbd = jnp.transpose(x_btd.astype(jnp.float32), (1, 0, 2))
    h1 = _lstm_layer_ref(x_tbd, params["w_ih0_t"], params["w_hh0_t"], params["b0"], H)
    h2 = _lstm_layer_ref(h1, params["w_ih1_t"], params["w_hh1_t"], params["b1"], H)
    r_out = jnp.transpose(h2, (1, 0, 2)).reshape(-1, H)
    return jnp.dot(r_out, params["w_fc_t"], precision="highest") + params["b_fc"]


if __name__ == "__main__":
    B, T = 2, 8
    input_dim, hidden_dim, output_dim = 8, 32, 4

    key = jax.random.PRNGKey(0)
    kparam, kx = jax.random.split(key)
    params = init_params(kparam, input_dim, hidden_dim, output_dim)
    x = jax.random.normal(kx, (B, T, input_dim), jnp.float32)

    out = lstm_rnn_forward(params, x)
    jax.block_until_ready(out)
    assert out.shape == (B * T, output_dim), out.shape

    ref = reference_forward(params, x)
    max_err = float(jnp.max(jnp.abs(out - ref)))
    # bf16 matmul operands (f32 accumulation, f32 h/c carry) vs f32 reference.
    assert max_err < 5e-2, f"mismatch vs reference: {max_err}"

    print("KERNEL_OK")
</pallas_src>

<mosaic_0001>
module attributes {stable_mosaic.version = 11 : i64} {
  func.func @_fused_lstm2_fc_kernel(%arg0: i32, %arg1: i32, %arg2: memref<8x2x8xbf16, #tpu.memory_space<vmem>>, %arg3: memref<8x128xbf16, #tpu.memory_space<vmem>>, %arg4: memref<1x128xf32, #tpu.memory_space<vmem>>, %arg5: memref<64x256xbf16, #tpu.memory_space<vmem>>, %arg6: memref<1x128xf32, #tpu.memory_space<vmem>>, %arg7: memref<32x4xbf16, #tpu.memory_space<vmem>>, %arg8: memref<1x4xf32, #tpu.memory_space<vmem>>, %arg9: memref<8x2x4xf32, #tpu.memory_space<vmem>>, %arg10: memref<2x128xf32, #tpu.memory_space<vmem>>, %arg11: memref<2x32xf32, #tpu.memory_space<vmem>>, %arg12: memref<2x32xf32, #tpu.memory_space<vmem>>, %arg13: memref<2x32xf32, #tpu.memory_space<vmem>>, %arg14: memref<8x2x128xf32, #tpu.memory_space<vmem>>, %arg15: memref<8x2x32xf32, #tpu.memory_space<vmem>>) attributes {dimension_semantics = [#tpu.dimension_semantics<parallel>, #tpu.dimension_semantics<arbitrary>], iteration_bounds = array<i64: 1, 1>, scalar_prefetch = 0 : i64, scratch_operands = 6 : i64, tpu.core_type = #tpu.core_type<tc>, window_params = [{transform_indices = @transform_0, window_bounds = array<i64: 8, 2, 8>}, {pipeline_mode = #tpu.pipeline_mode<synchronous>, transform_indices = @transform_1, window_bounds = array<i64: 8, 128>}, {pipeline_mode = #tpu.pipeline_mode<synchronous>, transform_indices = @transform_2, window_bounds = array<i64: 1, 128>}, {pipeline_mode = #tpu.pipeline_mode<synchronous>, transform_indices = @transform_3, window_bounds = array<i64: 64, 256>}, {pipeline_mode = #tpu.pipeline_mode<synchronous>, transform_indices = @transform_4, window_bounds = array<i64: 1, 128>}, {pipeline_mode = #tpu.pipeline_mode<synchronous>, transform_indices = @transform_5, window_bounds = array<i64: 32, 4>}, {pipeline_mode = #tpu.pipeline_mode<synchronous>, transform_indices = @transform_6, window_bounds = array<i64: 1, 4>}, {transform_indices = @transform_7, window_bounds = array<i64: 8, 2, 4>}]} {
    %c0_i32 = arith.constant 0 : i32
    %0 = arith.cmpi eq, %arg1, %c0_i32 : i32
    %1 = arith.extui %0 : i1 to i32
    %c0_i32_0 = arith.constant 0 : i32
    %2 = arith.cmpi ne, %1, %c0_i32_0 : i32
    scf.if %2 {
      %cst_234 = arith.constant 0.000000e+00 : f32
      %626 = vector.broadcast %cst_234 : f32 to vector<2x128xf32>
      %c0_235 = arith.constant 0 : index
      %c0_236 = arith.constant 0 : index
      %627 = vector.load %arg10[%c0_235, %c0_236] : memref<2x128xf32, #tpu.memory_space<vmem>>, vector<2x128xf32>
      tpu.vector_store %arg10[%c0_235, %c0_236], %626 {strides = array<i32>} : memref<2x128xf32, #tpu.memory_space<vmem>>, vector<2x128xf32>,
      %cst_237 = arith.constant 0.000000e+00 : f32
      %628 = vector.broadcast %cst_237 : f32 to vector<2x32xf32>
      %c0_238 = arith.constant 0 : index
      %c0_239 = arith.constant 0 : index
      %629 = vector.load %arg11[%c0_238, %c0_239] : memref<2x32xf32, #tpu.memory_space<vmem>>, vector<2x32xf32>
      tpu.vector_store %arg11[%c0_238, %c0_239], %628 {strides = array<i32>} : memref<2x32xf32, #tpu.memory_space<vmem>>, vector<2x32xf32>,
      %cst_240 = arith.constant 0.000000e+00 : f32
      %630 = vector.broadcast %cst_240 : f32 to vector<2x32xf32>
      %c0_241 = arith.constant 0 : index
      %c0_242 = arith.constant 0 : index
      %631 = vector.load %arg12[%c0_241, %c0_242] : memref<2x32xf32, #tpu.memory_space<vmem>>, vector<2x32xf32>
      tpu.vector_store %arg12[%c0_241, %c0_242], %630 {strides = array<i32>} : memref<2x32xf32, #tpu.memory_space<vmem>>, vector<2x32xf32>,
      %cst_243 = arith.constant 0.000000e+00 : f32
      %632 = vector.broadcast %cst_243 : f32 to vector<2x32xf32>
      %c0_244 = arith.constant 0 : index
      %c0_245 = arith.constant 0 : index
      %633 = vector.load %arg13[%c0_244, %c0_245] : memref<2x32xf32, #tpu.memory_space<vmem>>, vector<2x32xf32>
      tpu.vector_store %arg13[%c0_244, %c0_245], %632 {strides = array<i32>} : memref<2x32xf32, #tpu.memory_space<vmem>>, vector<2x32xf32>,
    } else {
    }
    %c0 = arith.constant 0 : index
    %c0_1 = arith.constant 0 : index
    %c0_2 = arith.constant 0 : index
    %3 = vector.load %arg2[%c0, %c0_1, %c0_2] : memref<8x2x8xbf16, #tpu.memory_space<vmem>>, vector<8x2x8xbf16>
    %4 = vector.shape_cast %3 : vector<8x2x8xbf16> to vector<16x8xbf16>
    %c0_3 = arith.constant 0 : index
    %c0_4 = arith.constant 0 : index
    %5 = vector.load %arg3[%c0_3, %c0_4] : memref<8x128xbf16, #tpu.memory_space<vmem>>, vector<8x128xbf16>
    %cst = arith.constant dense<0.000000e+00> : vector<16x128xf32>
    %6 = tpu.matmul %4, %5, %cst {dimension_numbers = #tpu.dot_dimension_numbers<[1], [0], [0], [1], [0, 0, 1, 1], [], []>} : vector<16x8xbf16>, vector<8x128xbf16>, vector<16x128xf32> -> vector<16x128xf32>
    %c0_5 = arith.constant 0 : index
    %c0_6 = arith.constant 0 : index
    %7 = vector.load %arg4[%c0_5, %c0_6] : memref<1x128xf32, #tpu.memory_space<vmem>>, vector<1x128xf32>
    %8 = vector.broadcast %7 : vector<1x128xf32> to vector<16x128xf32>
    %9 = arith.addf %6, %8 : vector<16x128xf32>
    %10 = vector.shape_cast %9 : vector<16x128xf32> to vector<8x2x128xf32>
    %c0_7 = arith.constant 0 : index
    %c0_8 = arith.constant 0 : index
    %c0_9 = arith.constant 0 : index
    %11 = vector.load %arg14[%c0_7, %c0_8, %c0_9] : memref<8x2x128xf32, #tpu.memory_space<vmem>>, vector<8x2x128xf32>
    tpu.vector_store %arg14[%c0_7, %c0_8, %c0_9], %10 {strides = array<i32>} : memref<8x2x128xf32, #tpu.memory_space<vmem>>, vector<8x2x128xf32>,
    %c0_10 = arith.constant 0 : index
    %c0_11 = arith.constant 0 : index
    %12 = vector.load %arg5[%c0_10, %c0_11] : memref<64x256xbf16, #tpu.memory_space<vmem>>, vector<64x256xbf16>
    %c0_12 = arith.constant 0 : index
    %c0_13 = arith.constant 0 : index
    %13 = vector.load %arg6[%c0_12, %c0_13] : memref<1x128xf32, #tpu.memory_space<vmem>>, vector<1x128xf32>
    %14 = vector.shape_cast %13 : vector<1x128xf32> to vector<1x128xf32>
    %15 = vector.broadcast %14 : vector<1x128xf32> to vector<2x128xf32>
    %c0_14 = arith.constant 0 : index
    %c0_15 = arith.constant 0 : index
    %16 = vector.load %arg10[%c0_14, %c0_15] : memref<2x128xf32, #tpu.memory_space<vmem>>, vector<2x128xf32>
    %c0_16 = arith.constant 0 : index
    %c0_17 = arith.constant 0 : index
    %17 = vector.load %arg11[%c0_16, %c0_17] : memref<2x32xf32, #tpu.memory_space<vmem>>, vector<2x32xf32>
    %c0_18 = arith.constant 0 : index
    %c0_19 = arith.constant 0 : index
    %18 = vector.load %arg12[%c0_18, %c0_19] : memref<2x32xf32, #tpu.memory_space<vmem>>, vector<2x32xf32>
    %c0_20 = arith.constant 0 : index
    %c0_21 = arith.constant 0 : index
    %19 = vector.load %arg13[%c0_20, %c0_21] : memref<2x32xf32, #tpu.memory_space<vmem>>, vector<2x32xf32>
    %c0_22 = arith.constant 0 : index
    %c0_23 = arith.constant 0 : index
    %c0_24 = arith.constant 0 : index
    %20 = vector.load %arg14[%c0_22, %c0_23, %c0_24] : memref<8x2x128xf32, #tpu.memory_space<vmem>>, vector<1x2x128xf32>
    %21 = vector.shape_cast %20 : vector<1x2x128xf32> to vector<2x128xf32>
    %22 = arith.addf %21, %16 : vector<2x128xf32>
    %23 = vector.extract_strided_slice %22 {offsets = [0, 0], sizes = [2, 32], strides = [1, 1]} : vector<2x128xf32> to vector<2x32xf32>
    %cst_25 = arith.constant 5.000000e-01 : f32
    %24 = vector.broadcast %cst_25 : f32 to vector<2x32xf32>
    %25 = arith.mulf %24, %23 : vector<2x32xf32>
    %26 = math.tanh %25 : vector<2x32xf32>
    %cst_26 = arith.constant 5.000000e-01 : f32
    %27 = vector.broadcast %cst_26 : f32 to vector<2x32xf32>
    %28 = arith.mulf %27, %26 : vector<2x32xf32>
    %cst_27 = arith.constant 5.000000e-01 : f32
    %29 = vector.broadcast %cst_27 : f32 to vector<2x32xf32>
    %30 = arith.addf %28, %29 : vector<2x32xf32>
    %31 = vector.extract_strided_slice %22 {offsets = [0, 32], sizes = [2, 32], strides = [1, 1]} : vector<2x128xf32> to vector<2x32xf32>
    %cst_28 = arith.constant 5.000000e-01 : f32
    %32 = vector.broadcast %cst_28 : f32 to vector<2x32xf32>
    %33 = arith.mulf %32, %31 : vector<2x32xf32>
    %34 = math.tanh %33 : vector<2x32xf32>
    %cst_29 = arith.constant 5.000000e-01 : f32
    %35 = vector.broadcast %cst_29 : f32 to vector<2x32xf32>
    %36 = arith.mulf %35, %34 : vector<2x32xf32>
    %cst_30 = arith.constant 5.000000e-01 : f32
    %37 = vector.broadcast %cst_30 : f32 to vector<2x32xf32>
    %38 = arith.addf %36, %37 : vector<2x32xf32>
    %39 = vector.extract_strided_slice %22 {offsets = [0, 64], sizes = [2, 32], strides = [1, 1]} : vector<2x128xf32> to vector<2x32xf32>
    %40 = math.tanh %39 : vector<2x32xf32>
    %41 = vector.extract_strided_slice %22 {offsets = [0, 96], sizes = [2, 32], strides = [1, 1]} : vector<2x128xf32> to vector<2x32xf32>
    %cst_31 = arith.constant 5.000000e-01 : f32
    %42 = vector.broadcast %cst_31 : f32 to vector<2x32xf32>
    %43 = arith.mulf %42, %41 : vector<2x32xf32>
    %44 = math.tanh %43 : vector<2x32xf32>
    %cst_32 = arith.constant 5.000000e-01 : f32
    %45 = vector.broadcast %cst_32 : f32 to vector<2x32xf32>
    %46 = arith.mulf %45, %44 : vector<2x32xf32>
    %cst_33 = arith.constant 5.000000e-01 : f32
    %47 = vector.broadcast %cst_33 : f32 to vector<2x32xf32>
    %48 = arith.addf %46, %47 : vector<2x32xf32>
    %49 = arith.mulf %38, %17 : vector<2x32xf32>
    %50 = arith.mulf %30, %40 : vector<2x32xf32>
    %51 = arith.addf %49, %50 : vector<2x32xf32>
    %52 = math.tanh %51 : vector<2x32xf32>
    %53 = arith.mulf %48, %52 : vector<2x32xf32>
    %54 = tpu.concatenate %53, %18 in 1 : vector<2x32xf32>, vector<2x32xf32> -> vector<2x64xf32>
    %55 = arith.truncf %54 : vector<2x64xf32> to vector<2x64xbf16>
    %cst_34 = arith.constant dense<0.000000e+00> : vector<2x256xf32>
    %56 = tpu.matmul %55, %12, %cst_34 {dimension_numbers = #tpu.dot_dimension_numbers<[1], [0], [0], [1], [0, 0, 1, 1], [], []>} : vector<2x64xbf16>, vector<64x256xbf16>, vector<2x256xf32> -> vector<2x256xf32>
    %57 = vector.extract_strided_slice %56 {offsets = [0, 0], sizes = [2, 128], strides = [1, 1]} : vector<2x256xf32> to vector<2x128xf32>
    %58 = vector.extract_strided_slice %56 {offsets = [0, 128], sizes = [2, 128], strides = [1, 1]} : vector<2x256xf32> to vector<2x128xf32>
    %59 = arith.addf %58, %15 : vector<2x128xf32>
    %60 = vector.extract_strided_slice %59 {offsets = [0, 0], sizes = [2, 32], strides = [1, 1]} : vector<2x128xf32> to vector<2x32xf32>
    %cst_35 = arith.constant 5.000000e-01 : f32
    %61 = vector.broadcast %cst_35 : f32 to vector<2x32xf32>
    %62 = arith.mulf %61, %60 : vector<2x32xf32>
    %63 = math.tanh %62 : vector<2x32xf32>
    %cst_36 = arith.constant 5.000000e-01 : f32
    %64 = vector.broadcast %cst_36 : f32 to vector<2x32xf32>
    %65 = arith.mulf %64, %63 : vector<2x32xf32>
    %cst_37 = arith.constant 5.000000e-01 : f32
    %66 = vector.broadcast %cst_37 : f32 to vector<2x32xf32>
    %67 = arith.addf %65, %66 : vector<2x32xf32>
    %68 = vector.extract_strided_slice %59 {offsets = [0, 32], sizes = [2, 32], strides = [1, 1]} : vector<2x128xf32> to vector<2x32xf32>
    %cst_38 = arith.constant 5.000000e-01 : f32
    %69 = vector.broadcast %cst_38 : f32 to vector<2x32xf32>
    %70 = arith.mulf %69, %68 : vector<2x32xf32>
    %71 = math.tanh %70 : vector<2x32xf32>
    %cst_39 = arith.constant 5.000000e-01 : f32
    %72 = vector.broadcast %cst_39 : f32 to vector<2x32xf32>
    %73 = arith.mulf %72, %71 : vector<2x32xf32>
    %cst_40 = arith.constant 5.000000e-01 : f32
    %74 = vector.broadcast %cst_40 : f32 to vector<2x32xf32>
    %75 = arith.addf %73, %74 : vector<2x32xf32>
    %76 = vector.extract_strided_slice %59 {offsets = [0, 64], sizes = [2, 32], strides = [1, 1]} : vector<2x128xf32> to vector<2x32xf32>
    %77 = math.tanh %76 : vector<2x32xf32>
    %78 = vector.extract_strided_slice %59 {offsets = [0, 96], sizes = [2, 32], strides = [1, 1]} : vector<2x128xf32> to vector<2x32xf32>
    %cst_41 = arith.constant 5.000000e-01 : f32
    %79 = vector.broadcast %cst_41 : f32 to vector<2x32xf32>
    %80 = arith.mulf %79, %78 : vector<2x32xf32>
    %81 = math.tanh %80 : vector<2x32xf32>
    %cst_42 = arith.constant 5.000000e-01 : f32
    %82 = vector.broadcast %cst_42 : f32 to vector<2x32xf32>
    %83 = arith.mulf %82, %81 : vector<2x32xf32>
    %cst_43 = arith.constant 5.000000e-01 : f32
    %84 = vector.broadcast %cst_43 : f32 to vector<2x32xf32>
    %85 = arith.addf %83, %84 : vector<2x32xf32>
    %86 = arith.mulf %75, %19 : vector<2x32xf32>
    %87 = arith.mulf %67, %77 : vector<2x32xf32>
    %88 = arith.addf %86, %87 : vector<2x32xf32>
    %89 = math.tanh %88 : vector<2x32xf32>
    %90 = arith.mulf %85, %89 : vector<2x32xf32>
    %c0_44 = arith.constant 0 : index
    %c0_45 = arith.constant 0 : index
    %c0_46 = arith.constant 0 : index
    %91 = vector.load %arg15[%c0_44, %c0_45, %c0_46] : memref<8x2x32xf32, #tpu.memory_space<vmem>>, vector<1x2x32xf32>
    %92 = vector.shape_cast %91 : vector<1x2x32xf32> to vector<2x32xf32>
    %93 = vector.shape_cast %90 : vector<2x32xf32> to vector<1x2x32xf32>
    tpu.vector_store %arg15[%c0_44, %c0_45, %c0_46], %93 {strides = array<i32>} : memref<8x2x32xf32, #tpu.memory_space<vmem>>, vector<1x2x32xf32>,
    %c1 = arith.constant 1 : index
    %c0_47 = arith.constant 0 : index
    %c0_48 = arith.constant 0 : index
    %94 = vector.load %arg14[%c1, %c0_47, %c0_48] : memref<8x2x128xf32, #tpu.memory_space<vmem>>, vector<1x2x128xf32>
    %95 = vector.shape_cast %94 : vector<1x2x128xf32> to vector<2x128xf32>
    %96 = arith.addf %95, %57 : vector<2x128xf32>
    %97 = vector.extract_strided_slice %96 {offsets = [0, 0], sizes = [2, 32], strides = [1, 1]} : vector<2x128xf32> to vector<2x32xf32>
    %cst_49 = arith.constant 5.000000e-01 : f32
    %98 = vector.broadcast %cst_49 : f32 to vector<2x32xf32>
    %99 = arith.mulf %98, %97 : vector<2x32xf32>
    %100 = math.tanh %99 : vector<2x32xf32>
    %cst_50 = arith.constant 5.000000e-01 : f32
    %101 = vector.broadcast %cst_50 : f32 to vector<2x32xf32>
    %102 = arith.mulf %101, %100 : vector<2x32xf32>
    %cst_51 = arith.constant 5.000000e-01 : f32
    %103 = vector.broadcast %cst_51 : f32 to vector<2x32xf32>
    %104 = arith.addf %102, %103 : vector<2x32xf32>
    %105 = vector.extract_strided_slice %96 {offsets = [0, 32], sizes = [2, 32], strides = [1, 1]} : vector<2x128xf32> to vector<2x32xf32>
    %cst_52 = arith.constant 5.000000e-01 : f32
    %106 = vector.broadcast %cst_52 : f32 to vector<2x32xf32>
    %107 = arith.mulf %106, %105 : vector<2x32xf32>
    %108 = math.tanh %107 : vector<2x32xf32>
    %cst_53 = arith.constant 5.000000e-01 : f32
    %109 = vector.broadcast %cst_53 : f32 to vector<2x32xf32>
    %110 = arith.mulf %109, %108 : vector<2x32xf32>
    %cst_54 = arith.constant 5.000000e-01 : f32
    %111 = vector.broadcast %cst_54 : f32 to vector<2x32xf32>
    %112 = arith.addf %110, %111 : vector<2x32xf32>
    %113 = vector.extract_strided_slice %96 {offsets = [0, 64], sizes = [2, 32], strides = [1, 1]} : vector<2x128xf32> to vector<2x32xf32>
    %114 = math.tanh %113 : vector<2x32xf32>
    %115 = vector.extract_strided_slice %96 {offsets = [0, 96], sizes = [2, 32], strides = [1, 1]} : vector<2x128xf32> to vector<2x32xf32>
    %cst_55 = arith.constant 5.000000e-01 : f32
    %116 = vector.broadcast %cst_55 : f32 to vector<2x32xf32>
    %117 = arith.mulf %116, %115 : vector<2x32xf32>
    %118 = math.tanh %117 : vector<2x32xf32>
    %cst_56 = arith.constant 5.000000e-01 : f32
    %119 = vector.broadcast %cst_56 : f32 to vector<2x32xf32>
    %120 = arith.mulf %119, %118 : vector<2x32xf32>
    %cst_57 = arith.constant 5.000000e-01 : f32
    %121 = vector.broadcast %cst_57 : f32 to vector<2x32xf32>
    %122 = arith.addf %120, %121 : vector<2x32xf32>
    %123 = arith.mulf %112, %51 : vector<2x32xf32>
    %124 = arith.mulf %104, %114 : vector<2x32xf32>
    %125 = arith.addf %123, %124 : vector<2x32xf32>
    %126 = math.tanh %125 : vector<2x32xf32>
    %127 = arith.mulf %122, %126 : vector<2x32xf32>
    %128 = tpu.concatenate %127, %90 in 1 : vector<2x32xf32>, vector<2x32xf32> -> vector<2x64xf32>
    %129 = arith.truncf %128 : vector<2x64xf32> to vector<2x64xbf16>
    %cst_58 = arith.constant dense<0.000000e+00> : vector<2x256xf32>
    %130 = tpu.matmul %129, %12, %cst_58 {dimension_numbers = #tpu.dot_dimension_numbers<[1], [0], [0], [1], [0, 0, 1, 1], [], []>} : vector<2x64xbf16>, vector<64x256xbf16>, vector<2x256xf32> -> vector<2x256xf32>
    %131 = vector.extract_strided_slice %130 {offsets = [0, 0], sizes = [2, 128], strides = [1, 1]} : vector<2x256xf32> to vector<2x128xf32>
    %132 = vector.extract_strided_slice %130 {offsets = [0, 128], sizes = [2, 128], strides = [1, 1]} : vector<2x256xf32> to vector<2x128xf32>
    %133 = arith.addf %132, %15 : vector<2x128xf32>
    %134 = vector.extract_strided_slice %133 {offsets = [0, 0], sizes = [2, 32], strides = [1, 1]} : vector<2x128xf32> to vector<2x32xf32>
    %cst_59 = arith.constant 5.000000e-01 : f32
    %135 = vector.broadcast %cst_59 : f32 to vector<2x32xf32>
    %136 = arith.mulf %135, %134 : vector<2x32xf32>
    %137 = math.tanh %136 : vector<2x32xf32>
    %cst_60 = arith.constant 5.000000e-01 : f32
    %138 = vector.broadcast %cst_60 : f32 to vector<2x32xf32>
    %139 = arith.mulf %138, %137 : vector<2x32xf32>
    %cst_61 = arith.constant 5.000000e-01 : f32
    %140 = vector.broadcast %cst_61 : f32 to vector<2x32xf32>
    %141 = arith.addf %139, %140 : vector<2x32xf32>
    %142 = vector.extract_strided_slice %133 {offsets = [0, 32], sizes = [2, 32], strides = [1, 1]} : vector<2x128xf32> to vector<2x32xf32>
    %cst_62 = arith.constant 5.000000e-01 : f32
    %143 = vector.broadcast %cst_62 : f32 to vector<2x32xf32>
    %144 = arith.mulf %143, %142 : vector<2x32xf32>
    %145 = math.tanh %144 : vector<2x32xf32>
    %cst_63 = arith.constant 5.000000e-01 : f32
    %146 = vector.broadcast %cst_63 : f32 to vector<2x32xf32>
    %147 = arith.mulf %146, %145 : vector<2x32xf32>
    %cst_64 = arith.constant 5.000000e-01 : f32
    %148 = vector.broadcast %cst_64 : f32 to vector<2x32xf32>
    %149 = arith.addf %147, %148 : vector<2x32xf32>
    %150 = vector.extract_strided_slice %133 {offsets = [0, 64], sizes = [2, 32], strides = [1, 1]} : vector<2x128xf32> to vector<2x32xf32>
    %151 = math.tanh %150 : vector<2x32xf32>
    %152 = vector.extract_strided_slice %133 {offsets = [0, 96], sizes = [2, 32], strides = [1, 1]} : vector<2x128xf32> to vector<2x32xf32>
    %cst_65 = arith.constant 5.000000e-01 : f32
    %153 = vector.broadcast %cst_65 : f32 to vector<2x32xf32>
    %154 = arith.mulf %153, %152 : vector<2x32xf32>
    %155 = math.tanh %154 : vector<2x32xf32>
    %cst_66 = arith.constant 5.000000e-01 : f32
    %156 = vector.broadcast %cst_66 : f32 to vector<2x32xf32>
    %157 = arith.mulf %156, %155 : vector<2x32xf32>
    %cst_67 = arith.constant 5.000000e-01 : f32
    %158 = vector.broadcast %cst_67 : f32 to vector<2x32xf32>
    %159 = arith.addf %157, %158 : vector<2x32xf32>
    %160 = arith.mulf %149, %88 : vector<2x32xf32>
    %161 = arith.mulf %141, %151 : vector<2x32xf32>
    %162 = arith.addf %160, %161 : vector<2x32xf32>
    %163 = math.tanh %162 : vector<2x32xf32>
    %164 = arith.mulf %159, %163 : vector<2x32xf32>
    %c1_68 = arith.constant 1 : index
    %c0_69 = arith.constant 0 : index
    %c0_70 = arith.constant 0 : index
    %165 = vector.load %arg15[%c1_68, %c0_69, %c0_70] : memref<8x2x32xf32, #tpu.memory_space<vmem>>, vector<1x2x32xf32>
    %166 = vector.shape_cast %165 : vector<1x2x32xf32> to vector<2x32xf32>
    %167 = vector.shape_cast %164 : vector<2x32xf32> to vector<1x2x32xf32>
    tpu.vector_store %arg15[%c1_68, %c0_69, %c0_70], %167 {strides = array<i32>} : memref<8x2x32xf32, #tpu.memory_space<vmem>>, vector<1x2x32xf32>,
    %c2 = arith.constant 2 : index
    %c0_71 = arith.constant 0 : index
    %c0_72 = arith.constant 0 : index
    %168 = vector.load %arg14[%c2, %c0_71, %c0_72] : memref<8x2x128xf32, #tpu.memory_space<vmem>>, vector<1x2x128xf32>
    %169 = vector.shape_cast %168 : vector<1x2x128xf32> to vector<2x128xf32>
    %170 = arith.addf %169, %131 : vector<2x128xf32>
    %171 = vector.extract_strided_slice %170 {offsets = [0, 0], sizes = [2, 32], strides = [1, 1]} : vector<2x128xf32> to vector<2x32xf32>
    %cst_73 = arith.constant 5.000000e-01 : f32
    %172 = vector.broadcast %cst_73 : f32 to vector<2x32xf32>
    %173 = arith.mulf %172, %171 : vector<2x32xf32>
    %174 = math.tanh %173 : vector<2x32xf32>
    %cst_74 = arith.constant 5.000000e-01 : f32
    %175 = vector.broadcast %cst_74 : f32 to vector<2x32xf32>
    %176 = arith.mulf %175, %174 : vector<2x32xf32>
    %cst_75 = arith.constant 5.000000e-01 : f32
    %177 = vector.broadcast %cst_75 : f32 to vector<2x32xf32>
    %178 = arith.addf %176, %177 : vector<2x32xf32>
    %179 = vector.extract_strided_slice %170 {offsets = [0, 32], sizes = [2, 32], strides = [1, 1]} : vector<2x128xf32> to vector<2x32xf32>
    %cst_76 = arith.constant 5.000000e-01 : f32
    %180 = vector.broadcast %cst_76 : f32 to vector<2x32xf32>
    %181 = arith.mulf %180, %179 : vector<2x32xf32>
    %182 = math.tanh %181 : vector<2x32xf32>
    %cst_77 = arith.constant 5.000000e-01 : f32
    %183 = vector.broadcast %cst_77 : f32 to vector<2x32xf32>
    %184 = arith.mulf %183, %182 : vector<2x32xf32>
    %cst_78 = arith.constant 5.000000e-01 : f32
    %185 = vector.broadcast %cst_78 : f32 to vector<2x32xf32>
    %186 = arith.addf %184, %185 : vector<2x32xf32>
    %187 = vector.extract_strided_slice %170 {offsets = [0, 64], sizes = [2, 32], strides = [1, 1]} : vector<2x128xf32> to vector<2x32xf32>
    %188 = math.tanh %187 : vector<2x32xf32>
    %189 = vector.extract_strided_slice %170 {offsets = [0, 96], sizes = [2, 32], strides = [1, 1]} : vector<2x128xf32> to vector<2x32xf32>
    %cst_79 = arith.constant 5.000000e-01 : f32
    %190 = vector.broadcast %cst_79 : f32 to vector<2x32xf32>
    %191 = arith.mulf %190, %189 : vector<2x32xf32>
    %192 = math.tanh %191 : vector<2x32xf32>
    %cst_80 = arith.constant 5.000000e-01 : f32
    %193 = vector.broadcast %cst_80 : f32 to vector<2x32xf32>
    %194 = arith.mulf %193, %192 : vector<2x32xf32>
    %cst_81 = arith.constant 5.000000e-01 : f32
    %195 = vector.broadcast %cst_81 : f32 to vector<2x32xf32>
    %196 = arith.addf %194, %195 : vector<2x32xf32>
    %197 = arith.mulf %186, %125 : vector<2x32xf32>
    %198 = arith.mulf %178, %188 : vector<2x32xf32>
    %199 = arith.addf %197, %198 : vector<2x32xf32>
    %200 = math.tanh %199 : vector<2x32xf32>
    %201 = arith.mulf %196, %200 : vector<2x32xf32>
    %202 = tpu.concatenate %201, %164 in 1 : vector<2x32xf32>, vector<2x32xf32> -> vector<2x64xf32>
    %203 = arith.truncf %202 : vector<2x64xf32> to vector<2x64xbf16>
    %cst_82 = arith.constant dense<0.000000e+00> : vector<2x256xf32>
    %204 = tpu.matmul %203, %12, %cst_82 {dimension_numbers = #tpu.dot_dimension_numbers<[1], [0], [0], [1], [0, 0, 1, 1], [], []>} : vector<2x64xbf16>, vector<64x256xbf16>, vector<2x256xf32> -> vector<2x256xf32>
    %205 = vector.extract_strided_slice %204 {offsets = [0, 0], sizes = [2, 128], strides = [1, 1]} : vector<2x256xf32> to vector<2x128xf32>
    %206 = vector.extract_strided_slice %204 {offsets = [0, 128], sizes = [2, 128], strides = [1, 1]} : vector<2x256xf32> to vector<2x128xf32>
    %207 = arith.addf %206, %15 : vector<2x128xf32>
    %208 = vector.extract_strided_slice %207 {offsets = [0, 0], sizes = [2, 32], strides = [1, 1]} : vector<2x128xf32> to vector<2x32xf32>
    %cst_83 = arith.constant 5.000000e-01 : f32
    %209 = vector.broadcast %cst_83 : f32 to vector<2x32xf32>
    %210 = arith.mulf %209, %208 : vector<2x32xf32>
    %211 = math.tanh %210 : vector<2x32xf32>
    %cst_84 = arith.constant 5.000000e-01 : f32
    %212 = vector.broadcast %cst_84 : f32 to vector<2x32xf32>
    %213 = arith.mulf %212, %211 : vector<2x32xf32>
    %cst_85 = arith.constant 5.000000e-01 : f32
    %214 = vector.broadcast %cst_85 : f32 to vector<2x32xf32>
    %215 = arith.addf %213, %214 : vector<2x32xf32>
    %216 = vector.extract_strided_slice %207 {offsets = [0, 32], sizes = [2, 32], strides = [1, 1]} : vector<2x128xf32> to vector<2x32xf32>
    %cst_86 = arith.constant 5.000000e-01 : f32
    %217 = vector.broadcast %cst_86 : f32 to vector<2x32xf32>
    %218 = arith.mulf %217, %216 : vector<2x32xf32>
    %219 = math.tanh %218 : vector<2x32xf32>
    %cst_87 = arith.constant 5.000000e-01 : f32
    %220 = vector.broadcast %cst_87 : f32 to vector<2x32xf32>
    %221 = arith.mulf %220, %219 : vector<2x32xf32>
    %cst_88 = arith.constant 5.000000e-01 : f32
    %222 = vector.broadcast %cst_88 : f32 to vector<2x32xf32>
    %223 = arith.addf %221, %222 : vector<2x32xf32>
    %224 = vector.extract_strided_slice %207 {offsets = [0, 64], sizes = [2, 32], strides = [1, 1]} : vector<2x128xf32> to vector<2x32xf32>
    %225 = math.tanh %224 : vector<2x32xf32>
    %226 = vector.extract_strided_slice %207 {offsets = [0, 96], sizes = [2, 32], strides = [1, 1]} : vector<2x128xf32> to vector<2x32xf32>
    %cst_89 = arith.constant 5.000000e-01 : f32
    %227 = vector.broadcast %cst_89 : f32 to vector<2x32xf32>
    %228 = arith.mulf %227, %226 : vector<2x32xf32>
    %229 = math.tanh %228 : vector<2x32xf32>
    %cst_90 = arith.constant 5.000000e-01 : f32
    %230 = vector.broadcast %cst_90 : f32 to vector<2x32xf32>
    %231 = arith.mulf %230, %229 : vector<2x32xf32>
    %cst_91 = arith.constant 5.000000e-01 : f32
    %232 = vector.broadcast %cst_91 : f32 to vector<2x32xf32>
    %233 = arith.addf %231, %232 : vector<2x32xf32>
    %234 = arith.mulf %223, %162 : vector<2x32xf32>
    %235 = arith.mulf %215, %225 : vector<2x32xf32>
    %236 = arith.addf %234, %235 : vector<2x32xf32>
    %237 = math.tanh %236 : vector<2x32xf32>
    %238 = arith.mulf %233, %237 : vector<2x32xf32>
    %c2_92 = arith.constant 2 : index
    %c0_93 = arith.constant 0 : index
    %c0_94 = arith.constant 0 : index
    %239 = vector.load %arg15[%c2_92, %c0_93, %c0_94] : memref<8x2x32xf32, #tpu.memory_space<vmem>>, vector<1x2x32xf32>
    %240 = vector.shape_cast %239 : vector<1x2x32xf32> to vector<2x32xf32>
    %241 = vector.shape_cast %238 : vector<2x32xf32> to vector<1x2x32xf32>
    tpu.vector_store %arg15[%c2_92, %c0_93, %c0_94], %241 {strides = array<i32>} : memref<8x2x32xf32, #tpu.memory_space<vmem>>, vector<1x2x32xf32>,
    %c3 = arith.constant 3 : index
    %c0_95 = arith.constant 0 : index
    %c0_96 = arith.constant 0 : index
    %242 = vector.load %arg14[%c3, %c0_95, %c0_96] : memref<8x2x128xf32, #tpu.memory_space<vmem>>, vector<1x2x128xf32>
    %243 = vector.shape_cast %242 : vector<1x2x128xf32> to vector<2x128xf32>
    %244 = arith.addf %243, %205 : vector<2x128xf32>
    %245 = vector.extract_strided_slice %244 {offsets = [0, 0], sizes = [2, 32], strides = [1, 1]} : vector<2x128xf32> to vector<2x32xf32>
    %cst_97 = arith.constant 5.000000e-01 : f32
    %246 = vector.broadcast %cst_97 : f32 to vector<2x32xf32>
    %247 = arith.mulf %246, %245 : vector<2x32xf32>
    %248 = math.tanh %247 : vector<2x32xf32>
    %cst_98 = arith.constant 5.000000e-01 : f32
    %249 = vector.broadcast %cst_98 : f32 to vector<2x32xf32>
    %250 = arith.mulf %249, %248 : vector<2x32xf32>
    %cst_99 = arith.constant 5.000000e-01 : f32
    %251 = vector.broadcast %cst_99 : f32 to vector<2x32xf32>
    %252 = arith.addf %250, %251 : vector<2x32xf32>
    %253 = vector.extract_strided_slice %244 {offsets = [0, 32], sizes = [2, 32], strides = [1, 1]} : vector<2x128xf32> to vector<2x32xf32>
    %cst_100 = arith.constant 5.000000e-01 : f32
    %254 = vector.broadcast %cst_100 : f32 to vector<2x32xf32>
    %255 = arith.mulf %254, %253 : vector<2x32xf32>
    %256 = math.tanh %255 : vector<2x32xf32>
    %cst_101 = arith.constant 5.000000e-01 : f32
    %257 = vector.broadcast %cst_101 : f32 to vector<2x32xf32>
    %258 = arith.mulf %257, %256 : vector<2x32xf32>
    %cst_102 = arith.constant 5.000000e-01 : f32
    %259 = vector.broadcast %cst_102 : f32 to vector<2x32xf32>
    %260 = arith.addf %258, %259 : vector<2x32xf32>
    %261 = vector.extract_strided_slice %244 {offsets = [0, 64], sizes = [2, 32], strides = [1, 1]} : vector<2x128xf32> to vector<2x32xf32>
    %262 = math.tanh %261 : vector<2x32xf32>
    %263 = vector.extract_strided_slice %244 {offsets = [0, 96], sizes = [2, 32], strides = [1, 1]} : vector<2x128xf32> to vector<2x32xf32>
    %cst_103 = arith.constant 5.000000e-01 : f32
    %264 = vector.broadcast %cst_103 : f32 to vector<2x32xf32>
    %265 = arith.mulf %264, %263 : vector<2x32xf32>
    %266 = math.tanh %265 : vector<2x32xf32>
    %cst_104 = arith.constant 5.000000e-01 : f32
    %267 = vector.broadcast %cst_104 : f32 to vector<2x32xf32>
    %268 = arith.mulf %267, %266 : vector<2x32xf32>
    %cst_105 = arith.constant 5.000000e-01 : f32
    %269 = vector.broadcast %cst_105 : f32 to vector<2x32xf32>
    %270 = arith.addf %268, %269 : vector<2x32xf32>
    %271 = arith.mulf %260, %199 : vector<2x32xf32>
    %272 = arith.mulf %252, %262 : vector<2x32xf32>
    %273 = arith.addf %271, %272 : vector<2x32xf32>
    %274 = math.tanh %273 : vector<2x32xf32>
    %275 = arith.mulf %270, %274 : vector<2x32xf32>
    %276 = tpu.concatenate %275, %238 in 1 : vector<2x32xf32>, vector<2x32xf32> -> vector<2x64xf32>
    %277 = arith.truncf %276 : vector<2x64xf32> to vector<2x64xbf16>
    %cst_106 = arith.constant dense<0.000000e+00> : vector<2x256xf32>
    %278 = tpu.matmul %277, %12, %cst_106 {dimension_numbers = #tpu.dot_dimension_numbers<[1], [0], [0], [1], [0, 0, 1, 1], [], []>} : vector<2x64xbf16>, vector<64x256xbf16>, vector<2x256xf32> -> vector<2x256xf32>
    %279 = vector.extract_strided_slice %278 {offsets = [0, 0], sizes = [2, 128], strides = [1, 1]} : vector<2x256xf32> to vector<2x128xf32>
    %280 = vector.extract_strided_slice %278 {offsets = [0, 128], sizes = [2, 128], strides = [1, 1]} : vector<2x256xf32> to vector<2x128xf32>
    %281 = arith.addf %280, %15 : vector<2x128xf32>
    %282 = vector.extract_strided_slice %281 {offsets = [0, 0], sizes = [2, 32], strides = [1, 1]} : vector<2x128xf32> to vector<2x32xf32>
    %cst_107 = arith.constant 5.000000e-01 : f32
    %283 = vector.broadcast %cst_107 : f32 to vector<2x32xf32>
    %284 = arith.mulf %283, %282 : vector<2x32xf32>
    %285 = math.tanh %284 : vector<2x32xf32>
    %cst_108 = arith.constant 5.000000e-01 : f32
    %286 = vector.broadcast %cst_108 : f32 to vector<2x32xf32>
    %287 = arith.mulf %286, %285 : vector<2x32xf32>
    %cst_109 = arith.constant 5.000000e-01 : f32
    %288 = vector.broadcast %cst_109 : f32 to vector<2x32xf32>
    %289 = arith.addf %287, %288 : vector<2x32xf32>
    %290 = vector.extract_strided_slice %281 {offsets = [0, 32], sizes = [2, 32], strides = [1, 1]} : vector<2x128xf32> to vector<2x32xf32>
    %cst_110 = arith.constant 5.000000e-01 : f32
    %291 = vector.broadcast %cst_110 : f32 to vector<2x32xf32>
    %292 = arith.mulf %291, %290 : vector<2x32xf32>
    %293 = math.tanh %292 : vector<2x32xf32>
    %cst_111 = arith.constant 5.000000e-01 : f32
    %294 = vector.broadcast %cst_111 : f32 to vector<2x32xf32>
    %295 = arith.mulf %294, %293 : vector<2x32xf32>
    %cst_112 = arith.constant 5.000000e-01 : f32
    %296 = vector.broadcast %cst_112 : f32 to vector<2x32xf32>
    %297 = arith.addf %295, %296 : vector<2x32xf32>
    %298 = vector.extract_strided_slice %281 {offsets = [0, 64], sizes = [2, 32], strides = [1, 1]} : vector<2x128xf32> to vector<2x32xf32>
    %299 = math.tanh %298 : vector<2x32xf32>
    %300 = vector.extract_strided_slice %281 {offsets = [0, 96], sizes = [2, 32], strides = [1, 1]} : vector<2x128xf32> to vector<2x32xf32>
    %cst_113 = arith.constant 5.000000e-01 : f32
    %301 = vector.broadcast %cst_113 : f32 to vector<2x32xf32>
    %302 = arith.mulf %301, %300 : vector<2x32xf32>
    %303 = math.tanh %302 : vector<2x32xf32>
    %cst_114 = arith.constant 5.000000e-01 : f32
    %304 = vector.broadcast %cst_114 : f32 to vector<2x32xf32>
    %305 = arith.mulf %304, %303 : vector<2x32xf32>
    %cst_115 = arith.constant 5.000000e-01 : f32
    %306 = vector.broadcast %cst_115 : f32 to vector<2x32xf32>
    %307 = arith.addf %305, %306 : vector<2x32xf32>
    %308 = arith.mulf %297, %236 : vector<2x32xf32>
    %309 = arith.mulf %289, %299 : vector<2x32xf32>
    %310 = arith.addf %308, %309 : vector<2x32xf32>
    %311 = math.tanh %310 : vector<2x32xf32>
    %312 = arith.mulf %307, %311 : vector<2x32xf32>
    %c3_116 = arith.constant 3 : index
    %c0_117 = arith.constant 0 : index
    %c0_118 = arith.constant 0 : index
    %313 = vector.load %arg15[%c3_116, %c0_117, %c0_118] : memref<8x2x32xf32, #tpu.memory_space<vmem>>, vector<1x2x32xf32>
    %314 = vector.shape_cast %313 : vector<1x2x32xf32> to vector<2x32xf32>
    %315 = vector.shape_cast %312 : vector<2x32xf32> to vector<1x2x32xf32>
    tpu.vector_store %arg15[%c3_116, %c0_117, %c0_118], %315 {strides = array<i32>} : memref<8x2x32xf32, #tpu.memory_space<vmem>>, vector<1x2x32xf32>,
    %c4 = arith.constant 4 : index
    %c0_119 = arith.constant 0 : index
    %c0_120 = arith.constant 0 : index
    %316 = vector.load %arg14[%c4, %c0_119, %c0_120] : memref<8x2x128xf32, #tpu.memory_space<vmem>>, vector<1x2x128xf32>
    %317 = vector.shape_cast %316 : vector<1x2x128xf32> to vector<2x128xf32>
    %318 = arith.addf %317, %279 : vector<2x128xf32>
    %319 = vector.extract_strided_slice %318 {offsets = [0, 0], sizes = [2, 32], strides = [1, 1]} : vector<2x128xf32> to vector<2x32xf32>
    %cst_121 = arith.constant 5.000000e-01 : f32
    %320 = vector.broadcast %cst_121 : f32 to vector<2x32xf32>
    %321 = arith.mulf %320, %319 : vector<2x32xf32>
    %322 = math.tanh %321 : vector<2x32xf32>
    %cst_122 = arith.constant 5.000000e-01 : f32
    %323 = vector.broadcast %cst_122 : f32 to vector<2x32xf32>
    %324 = arith.mulf %323, %322 : vector<2x32xf32>
    %cst_123 = arith.constant 5.000000e-01 : f32
    %325 = vector.broadcast %cst_123 : f32 to vector<2x32xf32>
    %326 = arith.addf %324, %325 : vector<2x32xf32>
    %327 = vector.extract_strided_slice %318 {offsets = [0, 32], sizes = [2, 32], strides = [1, 1]} : vector<2x128xf32> to vector<2x32xf32>
    %cst_124 = arith.constant 5.000000e-01 : f32
    %328 = vector.broadcast %cst_124 : f32 to vector<2x32xf32>
    %329 = arith.mulf %328, %327 : vector<2x32xf32>
    %330 = math.tanh %329 : vector<2x32xf32>
    %cst_125 = arith.constant 5.000000e-01 : f32
    %331 = vector.broadcast %cst_125 : f32 to vector<2x32xf32>
    %332 = arith.mulf %331, %330 : vector<2x32xf32>
    %cst_126 = arith.constant 5.000000e-01 : f32
    %333 = vector.broadcast %cst_126 : f32 to vector<2x32xf32>
    %334 = arith.addf %332, %333 : vector<2x32xf32>
    %335 = vector.extract_strided_slice %318 {offsets = [0, 64], sizes = [2, 32], strides = [1, 1]} : vector<2x128xf32> to vector<2x32xf32>
    %336 = math.tanh %335 : vector<2x32xf32>
    %337 = vector.extract_strided_slice %318 {offsets = [0, 96], sizes = [2, 32], strides = [1, 1]} : vector<2x128xf32> to vector<2x32xf32>
    %cst_127 = arith.constant 5.000000e-01 : f32
    %338 = vector.broadcast %cst_127 : f32 to vector<2x32xf32>
    %339 = arith.mulf %338, %337 : vector<2x32xf32>
    %340 = math.tanh %339 : vector<2x32xf32>
    %cst_128 = arith.constant 5.000000e-01 : f32
    %341 = vector.broadcast %cst_128 : f32 to vector<2x32xf32>
    %342 = arith.mulf %341, %340 : vector<2x32xf32>
    %cst_129 = arith.constant 5.000000e-01 : f32
    %343 = vector.broadcast %cst_129 : f32 to vector<2x32xf32>
    %344 = arith.addf %342, %343 : vector<2x32xf32>
    %345 = arith.mulf %334, %273 : vector<2x32xf32>
    %346 = arith.mulf %326, %336 : vector<2x32xf32>
    %347 = arith.addf %345, %346 : vector<2x32xf32>
    %348 = math.tanh %347 : vector<2x32xf32>
    %349 = arith.mulf %344, %348 : vector<2x32xf32>
    %350 = tpu.concatenate %349, %312 in 1 : vector<2x32xf32>, vector<2x32xf32> -> vector<2x64xf32>
    %351 = arith.truncf %350 : vector<2x64xf32> to vector<2x64xbf16>
    %cst_130 = arith.constant dense<0.000000e+00> : vector<2x256xf32>
    %352 = tpu.matmul %351, %12, %cst_130 {dimension_numbers = #tpu.dot_dimension_numbers<[1], [0], [0], [1], [0, 0, 1, 1], [], []>} : vector<2x64xbf16>, vector<64x256xbf16>, vector<2x256xf32> -> vector<2x256xf32>
    %353 = vector.extract_strided_slice %352 {offsets = [0, 0], sizes = [2, 128], strides = [1, 1]} : vector<2x256xf32> to vector<2x128xf32>
    %354 = vector.extract_strided_slice %352 {offsets = [0, 128], sizes = [2, 128], strides = [1, 1]} : vector<2x256xf32> to vector<2x128xf32>
    %355 = arith.addf %354, %15 : vector<2x128xf32>
    %356 = vector.extract_strided_slice %355 {offsets = [0, 0], sizes = [2, 32], strides = [1, 1]} : vector<2x128xf32> to vector<2x32xf32>
    %cst_131 = arith.constant 5.000000e-01 : f32
    %357 = vector.broadcast %cst_131 : f32 to vector<2x32xf32>
    %358 = arith.mulf %357, %356 : vector<2x32xf32>
    %359 = math.tanh %358 : vector<2x32xf32>
    %cst_132 = arith.constant 5.000000e-01 : f32
    %360 = vector.broadcast %cst_132 : f32 to vector<2x32xf32>
    %361 = arith.mulf %360, %359 : vector<2x32xf32>
    %cst_133 = arith.constant 5.000000e-01 : f32
    %362 = vector.broadcast %cst_133 : f32 to vector<2x32xf32>
    %363 = arith.addf %361, %362 : vector<2x32xf32>
    %364 = vector.extract_strided_slice %355 {offsets = [0, 32], sizes = [2, 32], strides = [1, 1]} : vector<2x128xf32> to vector<2x32xf32>
    %cst_134 = arith.constant 5.000000e-01 : f32
    %365 = vector.broadcast %cst_134 : f32 to vector<2x32xf32>
    %366 = arith.mulf %365, %364 : vector<2x32xf32>
    %367 = math.tanh %366 : vector<2x32xf32>
    %cst_135 = arith.constant 5.000000e-01 : f32
    %368 = vector.broadcast %cst_135 : f32 to vector<2x32xf32>
    %369 = arith.mulf %368, %367 : vector<2x32xf32>
    %cst_136 = arith.constant 5.000000e-01 : f32
    %370 = vector.broadcast %cst_136 : f32 to vector<2x32xf32>
    %371 = arith.addf %369, %370 : vector<2x32xf32>
    %372 = vector.extract_strided_slice %355 {offsets = [0, 64], sizes = [2, 32], strides = [1, 1]} : vector<2x128xf32> to vector<2x32xf32>
    %373 = math.tanh %372 : vector<2x32xf32>
    %374 = vector.extract_strided_slice %355 {offsets = [0, 96], sizes = [2, 32], strides = [1, 1]} : vector<2x128xf32> to vector<2x32xf32>
    %cst_137 = arith.constant 5.000000e-01 : f32
    %375 = vector.broadcast %cst_137 : f32 to vector<2x32xf32>
    %376 = arith.mulf %375, %374 : vector<2x32xf32>
    %377 = math.tanh %376 : vector<2x32xf32>
    %cst_138 = arith.constant 5.000000e-01 : f32
    %378 = vector.broadcast %cst_138 : f32 to vector<2x32xf32>
    %379 = arith.mulf %378, %377 : vector<2x32xf32>
    %cst_139 = arith.constant 5.000000e-01 : f32
    %380 = vector.broadcast %cst_139 : f32 to vector<2x32xf32>
    %381 = arith.addf %379, %380 : vector<2x32xf32>
    %382 = arith.mulf %371, %310 : vector<2x32xf32>
    %383 = arith.mulf %363, %373 : vector<2x32xf32>
    %384 = arith.addf %382, %383 : vector<2x32xf32>
    %385 = math.tanh %384 : vector<2x32xf32>
    %386 = arith.mulf %381, %385 : vector<2x32xf32>
    %c4_140 = arith.constant 4 : index
    %c0_141 = arith.constant 0 : index
    %c0_142 = arith.constant 0 : index
    %387 = vector.load %arg15[%c4_140, %c0_141, %c0_142] : memref<8x2x32xf32, #tpu.memory_space<vmem>>, vector<1x2x32xf32>
    %388 = vector.shape_cast %387 : vector<1x2x32xf32> to vector<2x32xf32>
    %389 = vector.shape_cast %386 : vector<2x32xf32> to vector<1x2x32xf32>
    tpu.vector_store %arg15[%c4_140, %c0_141, %c0_142], %389 {strides = array<i32>} : memref<8x2x32xf32, #tpu.memory_space<vmem>>, vector<1x2x32xf32>,
    %c5 = arith.constant 5 : index
    %c0_143 = arith.constant 0 : index
    %c0_144 = arith.constant 0 : index
    %390 = vector.load %arg14[%c5, %c0_143, %c0_144] : memref<8x2x128xf32, #tpu.memory_space<vmem>>, vector<1x2x128xf32>
    %391 = vector.shape_cast %390 : vector<1x2x128xf32> to vector<2x128xf32>
    %392 = arith.addf %391, %353 : vector<2x128xf32>
    %393 = vector.extract_strided_slice %392 {offsets = [0, 0], sizes = [2, 32], strides = [1, 1]} : vector<2x128xf32> to vector<2x32xf32>
    %cst_145 = arith.constant 5.000000e-01 : f32
    %394 = vector.broadcast %cst_145 : f32 to vector<2x32xf32>
    %395 = arith.mulf %394, %393 : vector<2x32xf32>
    %396 = math.tanh %395 : vector<2x32xf32>
    %cst_146 = arith.constant 5.000000e-01 : f32
    %397 = vector.broadcast %cst_146 : f32 to vector<2x32xf32>
    %398 = arith.mulf %397, %396 : vector<2x32xf32>
    %cst_147 = arith.constant 5.000000e-01 : f32
    %399 = vector.broadcast %cst_147 : f32 to vector<2x32xf32>
    %400 = arith.addf %398, %399 : vector<2x32xf32>
    %401 = vector.extract_strided_slice %392 {offsets = [0, 32], sizes = [2, 32], strides = [1, 1]} : vector<2x128xf32> to vector<2x32xf32>
    %cst_148 = arith.constant 5.000000e-01 : f32
    %402 = vector.broadcast %cst_148 : f32 to vector<2x32xf32>
    %403 = arith.mulf %402, %401 : vector<2x32xf32>
    %404 = math.tanh %403 : vector<2x32xf32>
    %cst_149 = arith.constant 5.000000e-01 : f32
    %405 = vector.broadcast %cst_149 : f32 to vector<2x32xf32>
    %406 = arith.mulf %405, %404 : vector<2x32xf32>
    %cst_150 = arith.constant 5.000000e-01 : f32
    %407 = vector.broadcast %cst_150 : f32 to vector<2x32xf32>
    %408 = arith.addf %406, %407 : vector<2x32xf32>
    %409 = vector.extract_strided_slice %392 {offsets = [0, 64], sizes = [2, 32], strides = [1, 1]} : vector<2x128xf32> to vector<2x32xf32>
    %410 = math.tanh %409 : vector<2x32xf32>
    %411 = vector.extract_strided_slice %392 {offsets = [0, 96], sizes = [2, 32], strides = [1, 1]} : vector<2x128xf32> to vector<2x32xf32>
    %cst_151 = arith.constant 5.000000e-01 : f32
    %412 = vector.broadcast %cst_151 : f32 to vector<2x32xf32>
    %413 = arith.mulf %412, %411 : vector<2x32xf32>
    %414 = math.tanh %413 : vector<2x32xf32>
    %cst_152 = arith.constant 5.000000e-01 : f32
    %415 = vector.broadcast %cst_152 : f32 to vector<2x32xf32>
    %416 = arith.mulf %415, %414 : vector<2x32xf32>
    %cst_153 = arith.constant 5.000000e-01 : f32
    %417 = vector.broadcast %cst_153 : f32 to vector<2x32xf32>
    %418 = arith.addf %416, %417 : vector<2x32xf32>
    %419 = arith.mulf %408, %347 : vector<2x32xf32>
    %420 = arith.mulf %400, %410 : vector<2x32xf32>
    %421 = arith.addf %419, %420 : vector<2x32xf32>
    %422 = math.tanh %421 : vector<2x32xf32>
    %423 = arith.mulf %418, %422 : vector<2x32xf32>
    %424 = tpu.concatenate %423, %386 in 1 : vector<2x32xf32>, vector<2x32xf32> -> vector<2x64xf32>
    %425 = arith.truncf %424 : vector<2x64xf32> to vector<2x64xbf16>
    %cst_154 = arith.constant dense<0.000000e+00> : vector<2x256xf32>
    %426 = tpu.matmul %425, %12, %cst_154 {dimension_numbers = #tpu.dot_dimension_numbers<[1], [0], [0], [1], [0, 0, 1, 1], [], []>} : vector<2x64xbf16>, vector<64x256xbf16>, vector<2x256xf32> -> vector<2x256xf32>
    %427 = vector.extract_strided_slice %426 {offsets = [0, 0], sizes = [2, 128], strides = [1, 1]} : vector<2x256xf32> to vector<2x128xf32>
    %428 = vector.extract_strided_slice %426 {offsets = [0, 128], sizes = [2, 128], strides = [1, 1]} : vector<2x256xf32> to vector<2x128xf32>
    %429 = arith.addf %428, %15 : vector<2x128xf32>
    %430 = vector.extract_strided_slice %429 {offsets = [0, 0], sizes = [2, 32], strides = [1, 1]} : vector<2x128xf32> to vector<2x32xf32>
    %cst_155 = arith.constant 5.000000e-01 : f32
    %431 = vector.broadcast %cst_155 : f32 to vector<2x32xf32>
    %432 = arith.mulf %431, %430 : vector<2x32xf32>
    %433 = math.tanh %432 : vector<2x32xf32>
    %cst_156 = arith.constant 5.000000e-01 : f32
    %434 = vector.broadcast %cst_156 : f32 to vector<2x32xf32>
    %435 = arith.mulf %434, %433 : vector<2x32xf32>
    %cst_157 = arith.constant 5.000000e-01 : f32
    %436 = vector.broadcast %cst_157 : f32 to vector<2x32xf32>
    %437 = arith.addf %435, %436 : vector<2x32xf32>
    %438 = vector.extract_strided_slice %429 {offsets = [0, 32], sizes = [2, 32], strides = [1, 1]} : vector<2x128xf32> to vector<2x32xf32>
    %cst_158 = arith.constant 5.000000e-01 : f32
    %439 = vector.broadcast %cst_158 : f32 to vector<2x32xf32>
    %440 = arith.mulf %439, %438 : vector<2x32xf32>
    %441 = math.tanh %440 : vector<2x32xf32>
    %cst_159 = arith.constant 5.000000e-01 : f32
    %442 = vector.broadcast %cst_159 : f32 to vector<2x32xf32>
    %443 = arith.mulf %442, %441 : vector<2x32xf32>
    %cst_160 = arith.constant 5.000000e-01 : f32
    %444 = vector.broadcast %cst_160 : f32 to vector<2x32xf32>
    %445 = arith.addf %443, %444 : vector<2x32xf32>
    %446 = vector.extract_strided_slice %429 {offsets = [0, 64], sizes = [2, 32], strides = [1, 1]} : vector<2x128xf32> to vector<2x32xf32>
    %447 = math.tanh %446 : vector<2x32xf32>
    %448 = vector.extract_strided_slice %429 {offsets = [0, 96], sizes = [2, 32], strides = [1, 1]} : vector<2x128xf32> to vector<2x32xf32>
    %cst_161 = arith.constant 5.000000e-01 : f32
    %449 = vector.broadcast %cst_161 : f32 to vector<2x32xf32>
    %450 = arith.mulf %449, %448 : vector<2x32xf32>
    %451 = math.tanh %450 : vector<2x32xf32>
    %cst_162 = arith.constant 5.000000e-01 : f32
    %452 = vector.broadcast %cst_162 : f32 to vector<2x32xf32>
    %453 = arith.mulf %452, %451 : vector<2x32xf32>
    %cst_163 = arith.constant 5.000000e-01 : f32
    %454 = vector.broadcast %cst_163 : f32 to vector<2x32xf32>
    %455 = arith.addf %453, %454 : vector<2x32xf32>
    %456 = arith.mulf %445, %384 : vector<2x32xf32>
    %457 = arith.mulf %437, %447 : vector<2x32xf32>
    %458 = arith.addf %456, %457 : vector<2x32xf32>
    %459 = math.tanh %458 : vector<2x32xf32>
    %460 = arith.mulf %455, %459 : vector<2x32xf32>
    %c5_164 = arith.constant 5 : index
    %c0_165 = arith.constant 0 : index
    %c0_166 = arith.constant 0 : index
    %461 = vector.load %arg15[%c5_164, %c0_165, %c0_166] : memref<8x2x32xf32, #tpu.memory_space<vmem>>, vector<1x2x32xf32>
    %462 = vector.shape_cast %461 : vector<1x2x32xf32> to vector<2x32xf32>
    %463 = vector.shape_cast %460 : vector<2x32xf32> to vector<1x2x32xf32>
    tpu.vector_store %arg15[%c5_164, %c0_165, %c0_166], %463 {strides = array<i32>} : memref<8x2x32xf32, #tpu.memory_space<vmem>>, vector<1x2x32xf32>,
    %c6 = arith.constant 6 : index
    %c0_167 = arith.constant 0 : index
    %c0_168 = arith.constant 0 : index
    %464 = vector.load %arg14[%c6, %c0_167, %c0_168] : memref<8x2x128xf32, #tpu.memory_space<vmem>>, vector<1x2x128xf32>
    %465 = vector.shape_cast %464 : vector<1x2x128xf32> to vector<2x128xf32>
    %466 = arith.addf %465, %427 : vector<2x128xf32>
    %467 = vector.extract_strided_slice %466 {offsets = [0, 0], sizes = [2, 32], strides = [1, 1]} : vector<2x128xf32> to vector<2x32xf32>
    %cst_169 = arith.constant 5.000000e-01 : f32
    %468 = vector.broadcast %cst_169 : f32 to vector<2x32xf32>
    %469 = arith.mulf %468, %467 : vector<2x32xf32>
    %470 = math.tanh %469 : vector<2x32xf32>
    %cst_170 = arith.constant 5.000000e-01 : f32
    %471 = vector.broadcast %cst_170 : f32 to vector<2x32xf32>
    %472 = arith.mulf %471, %470 : vector<2x32xf32>
    %cst_171 = arith.constant 5.000000e-01 : f32
    %473 = vector.broadcast %cst_171 : f32 to vector<2x32xf32>
    %474 = arith.addf %472, %473 : vector<2x32xf32>
    %475 = vector.extract_strided_slice %466 {offsets = [0, 32], sizes = [2, 32], strides = [1, 1]} : vector<2x128xf32> to vector<2x32xf32>
    %cst_172 = arith.constant 5.000000e-01 : f32
    %476 = vector.broadcast %cst_172 : f32 to vector<2x32xf32>
    %477 = arith.mulf %476, %475 : vector<2x32xf32>
    %478 = math.tanh %477 : vector<2x32xf32>
    %cst_173 = arith.constant 5.000000e-01 : f32
    %479 = vector.broadcast %cst_173 : f32 to vector<2x32xf32>
    %480 = arith.mulf %479, %478 : vector<2x32xf32>
    %cst_174 = arith.constant 5.000000e-01 : f32
    %481 = vector.broadcast %cst_174 : f32 to vector<2x32xf32>
    %482 = arith.addf %480, %481 : vector<2x32xf32>
    %483 = vector.extract_strided_slice %466 {offsets = [0, 64], sizes = [2, 32], strides = [1, 1]} : vector<2x128xf32> to vector<2x32xf32>
    %484 = math.tanh %483 : vector<2x32xf32>
    %485 = vector.extract_strided_slice %466 {offsets = [0, 96], sizes = [2, 32], strides = [1, 1]} : vector<2x128xf32> to vector<2x32xf32>
    %cst_175 = arith.constant 5.000000e-01 : f32
    %486 = vector.broadcast %cst_175 : f32 to vector<2x32xf32>
    %487 = arith.mulf %486, %485 : vector<2x32xf32>
    %488 = math.tanh %487 : vector<2x32xf32>
    %cst_176 = arith.constant 5.000000e-01 : f32
    %489 = vector.broadcast %cst_176 : f32 to vector<2x32xf32>
    %490 = arith.mulf %489, %488 : vector<2x32xf32>
    %cst_177 = arith.constant 5.000000e-01 : f32
    %491 = vector.broadcast %cst_177 : f32 to vector<2x32xf32>
    %492 = arith.addf %490, %491 : vector<2x32xf32>
    %493 = arith.mulf %482, %421 : vector<2x32xf32>
    %494 = arith.mulf %474, %484 : vector<2x32xf32>
    %495 = arith.addf %493, %494 : vector<2x32xf32>
    %496 = math.tanh %495 : vector<2x32xf32>
    %497 = arith.mulf %492, %496 : vector<2x32xf32>
    %498 = tpu.concatenate %497, %460 in 1 : vector<2x32xf32>, vector<2x32xf32> -> vector<2x64xf32>
    %499 = arith.truncf %498 : vector<2x64xf32> to vector<2x64xbf16>
    %cst_178 = arith.constant dense<0.000000e+00> : vector<2x256xf32>
    %500 = tpu.matmul %499, %12, %cst_178 {dimension_numbers = #tpu.dot_dimension_numbers<[1], [0], [0], [1], [0, 0, 1, 1], [], []>} : vector<2x64xbf16>, vector<64x256xbf16>, vector<2x256xf32> -> vector<2x256xf32>
    %501 = vector.extract_strided_slice %500 {offsets = [0, 0], sizes = [2, 128], strides = [1, 1]} : vector<2x256xf32> to vector<2x128xf32>
    %502 = vector.extract_strided_slice %500 {offsets = [0, 128], sizes = [2, 128], strides = [1, 1]} : vector<2x256xf32> to vector<2x128xf32>
    %503 = arith.addf %502, %15 : vector<2x128xf32>
    %504 = vector.extract_strided_slice %503 {offsets = [0, 0], sizes = [2, 32], strides = [1, 1]} : vector<2x128xf32> to vector<2x32xf32>
    %cst_179 = arith.constant 5.000000e-01 : f32
    %505 = vector.broadcast %cst_179 : f32 to vector<2x32xf32>
    %506 = arith.mulf %505, %504 : vector<2x32xf32>
    %507 = math.tanh %506 : vector<2x32xf32>
    %cst_180 = arith.constant 5.000000e-01 : f32
    %508 = vector.broadcast %cst_180 : f32 to vector<2x32xf32>
    %509 = arith.mulf %508, %507 : vector<2x32xf32>
    %cst_181 = arith.constant 5.000000e-01 : f32
    %510 = vector.broadcast %cst_181 : f32 to vector<2x32xf32>
    %511 = arith.addf %509, %510 : vector<2x32xf32>
    %512 = vector.extract_strided_slice %503 {offsets = [0, 32], sizes = [2, 32], strides = [1, 1]} : vector<2x128xf32> to vector<2x32xf32>
    %cst_182 = arith.constant 5.000000e-01 : f32
    %513 = vector.broadcast %cst_182 : f32 to vector<2x32xf32>
    %514 = arith.mulf %513, %512 : vector<2x32xf32>
    %515 = math.tanh %514 : vector<2x32xf32>
    %cst_183 = arith.constant 5.000000e-01 : f32
    %516 = vector.broadcast %cst_183 : f32 to vector<2x32xf32>
    %517 = arith.mulf %516, %515 : vector<2x32xf32>
    %cst_184 = arith.constant 5.000000e-01 : f32
    %518 = vector.broadcast %cst_184 : f32 to vector<2x32xf32>
    %519 = arith.addf %517, %518 : vector<2x32xf32>
    %520 = vector.extract_strided_slice %503 {offsets = [0, 64], sizes = [2, 32], strides = [1, 1]} : vector<2x128xf32> to vector<2x32xf32>
    %521 = math.tanh %520 : vector<2x32xf32>
    %522 = vector.extract_strided_slice %503 {offsets = [0, 96], sizes = [2, 32], strides = [1, 1]} : vector<2x128xf32> to vector<2x32xf32>
    %cst_185 = arith.constant 5.000000e-01 : f32
    %523 = vector.broadcast %cst_185 : f32 to vector<2x32xf32>
    %524 = arith.mulf %523, %522 : vector<2x32xf32>
    %525 = math.tanh %524 : vector<2x32xf32>
    %cst_186 = arith.constant 5.000000e-01 : f32
    %526 = vector.broadcast %cst_186 : f32 to vector<2x32xf32>
    %527 = arith.mulf %526, %525 : vector<2x32xf32>
    %cst_187 = arith.constant 5.000000e-01 : f32
    %528 = vector.broadcast %cst_187 : f32 to vector<2x32xf32>
    %529 = arith.addf %527, %528 : vector<2x32xf32>
    %530 = arith.mulf %519, %458 : vector<2x32xf32>
    %531 = arith.mulf %511, %521 : vector<2x32xf32>
    %532 = arith.addf %530, %531 : vector<2x32xf32>
    %533 = math.tanh %532 : vector<2x32xf32>
    %534 = arith.mulf %529, %533 : vector<2x32xf32>
    %c6_188 = arith.constant 6 : index
    %c0_189 = arith.constant 0 : index
    %c0_190 = arith.constant 0 : index
    %535 = vector.load %arg15[%c6_188, %c0_189, %c0_190] : memref<8x2x32xf32, #tpu.memory_space<vmem>>, vector<1x2x32xf32>
    %536 = vector.shape_cast %535 : vector<1x2x32xf32> to vector<2x32xf32>
    %537 = vector.shape_cast %534 : vector<2x32xf32> to vector<1x2x32xf32>
    tpu.vector_store %arg15[%c6_188, %c0_189, %c0_190], %537 {strides = array<i32>} : memref<8x2x32xf32, #tpu.memory_space<vmem>>, vector<1x2x32xf32>,
    %c7 = arith.constant 7 : index
    %c0_191 = arith.constant 0 : index
    %c0_192 = arith.constant 0 : index
    %538 = vector.load %arg14[%c7, %c0_191, %c0_192] : memref<8x2x128xf32, #tpu.memory_space<vmem>>, vector<1x2x128xf32>
    %539 = vector.shape_cast %538 : vector<1x2x128xf32> to vector<2x128xf32>
    %540 = arith.addf %539, %501 : vector<2x128xf32>
    %541 = vector.extract_strided_slice %540 {offsets = [0, 0], sizes = [2, 32], strides = [1, 1]} : vector<2x128xf32> to vector<2x32xf32>
    %cst_193 = arith.constant 5.000000e-01 : f32
    %542 = vector.broadcast %cst_193 : f32 to vector<2x32xf32>
    %543 = arith.mulf %542, %541 : vector<2x32xf32>
    %544 = math.tanh %543 : vector<2x32xf32>
    %cst_194 = arith.constant 5.000000e-01 : f32
    %545 = vector.broadcast %cst_194 : f32 to vector<2x32xf32>
    %546 = arith.mulf %545, %544 : vector<2x32xf32>
    %cst_195 = arith.constant 5.000000e-01 : f32
    %547 = vector.broadcast %cst_195 : f32 to vector<2x32xf32>
    %548 = arith.addf %546, %547 : vector<2x32xf32>
    %549 = vector.extract_strided_slice %540 {offsets = [0, 32], sizes = [2, 32], strides = [1, 1]} : vector<2x128xf32> to vector<2x32xf32>
    %cst_196 = arith.constant 5.000000e-01 : f32
    %550 = vector.broadcast %cst_196 : f32 to vector<2x32xf32>
    %551 = arith.mulf %550, %549 : vector<2x32xf32>
    %552 = math.tanh %551 : vector<2x32xf32>
    %cst_197 = arith.constant 5.000000e-01 : f32
    %553 = vector.broadcast %cst_197 : f32 to vector<2x32xf32>
    %554 = arith.mulf %553, %552 : vector<2x32xf32>
    %cst_198 = arith.constant 5.000000e-01 : f32
    %555 = vector.broadcast %cst_198 : f32 to vector<2x32xf32>
    %556 = arith.addf %554, %555 : vector<2x32xf32>
    %557 = vector.extract_strided_slice %540 {offsets = [0, 64], sizes = [2, 32], strides = [1, 1]} : vector<2x128xf32> to vector<2x32xf32>
    %558 = math.tanh %557 : vector<2x32xf32>
    %559 = vector.extract_strided_slice %540 {offsets = [0, 96], sizes = [2, 32], strides = [1, 1]} : vector<2x128xf32> to vector<2x32xf32>
    %cst_199 = arith.constant 5.000000e-01 : f32
    %560 = vector.broadcast %cst_199 : f32 to vector<2x32xf32>
    %561 = arith.mulf %560, %559 : vector<2x32xf32>
    %562 = math.tanh %561 : vector<2x32xf32>
    %cst_200 = arith.constant 5.000000e-01 : f32
    %563 = vector.broadcast %cst_200 : f32 to vector<2x32xf32>
    %564 = arith.mulf %563, %562 : vector<2x32xf32>
    %cst_201 = arith.constant 5.000000e-01 : f32
    %565 = vector.broadcast %cst_201 : f32 to vector<2x32xf32>
    %566 = arith.addf %564, %565 : vector<2x32xf32>
    %567 = arith.mulf %556, %495 : vector<2x32xf32>
    %568 = arith.mulf %548, %558 : vector<2x32xf32>
    %569 = arith.addf %567, %568 : vector<2x32xf32>
    %570 = math.tanh %569 : vector<2x32xf32>
    %571 = arith.mulf %566, %570 : vector<2x32xf32>
    %572 = tpu.concatenate %571, %534 in 1 : vector<2x32xf32>, vector<2x32xf32> -> vector<2x64xf32>
    %573 = arith.truncf %572 : vector<2x64xf32> to vector<2x64xbf16>
    %cst_202 = arith.constant dense<0.000000e+00> : vector<2x256xf32>
    %574 = tpu.matmul %573, %12, %cst_202 {dimension_numbers = #tpu.dot_dimension_numbers<[1], [0], [0], [1], [0, 0, 1, 1], [], []>} : vector<2x64xbf16>, vector<64x256xbf16>, vector<2x256xf32> -> vector<2x256xf32>
    %575 = vector.extract_strided_slice %574 {offsets = [0, 0], sizes = [2, 128], strides = [1, 1]} : vector<2x256xf32> to vector<2x128xf32>
    %576 = vector.extract_strided_slice %574 {offsets = [0, 128], sizes = [2, 128], strides = [1, 1]} : vector<2x256xf32> to vector<2x128xf32>
    %577 = arith.addf %576, %15 : vector<2x128xf32>
    %578 = vector.extract_strided_slice %577 {offsets = [0, 0], sizes = [2, 32], strides = [1, 1]} : vector<2x128xf32> to vector<2x32xf32>
    %cst_203 = arith.constant 5.000000e-01 : f32
    %579 = vector.broadcast %cst_203 : f32 to vector<2x32xf32>
    %580 = arith.mulf %579, %578 : vector<2x32xf32>
    %581 = math.tanh %580 : vector<2x32xf32>
    %cst_204 = arith.constant 5.000000e-01 : f32
    %582 = vector.broadcast %cst_204 : f32 to vector<2x32xf32>
    %583 = arith.mulf %582, %581 : vector<2x32xf32>
    %cst_205 = arith.constant 5.000000e-01 : f32
    %584 = vector.broadcast %cst_205 : f32 to vector<2x32xf32>
    %585 = arith.addf %583, %584 : vector<2x32xf32>
    %586 = vector.extract_strided_slice %577 {offsets = [0, 32], sizes = [2, 32], strides = [1, 1]} : vector<2x128xf32> to vector<2x32xf32>
    %cst_206 = arith.constant 5.000000e-01 : f32
    %587 = vector.broadcast %cst_206 : f32 to vector<2x32xf32>
    %588 = arith.mulf %587, %586 : vector<2x32xf32>
    %589 = math.tanh %588 : vector<2x32xf32>
    %cst_207 = arith.constant 5.000000e-01 : f32
    %590 = vector.broadcast %cst_207 : f32 to vector<2x32xf32>
    %591 = arith.mulf %590, %589 : vector<2x32xf32>
    %cst_208 = arith.constant 5.000000e-01 : f32
    %592 = vector.broadcast %cst_208 : f32 to vector<2x32xf32>
    %593 = arith.addf %591, %592 : vector<2x32xf32>
    %594 = vector.extract_strided_slice %577 {offsets = [0, 64], sizes = [2, 32], strides = [1, 1]} : vector<2x128xf32> to vector<2x32xf32>
    %595 = math.tanh %594 : vector<2x32xf32>
    %596 = vector.extract_strided_slice %577 {offsets = [0, 96], sizes = [2, 32], strides = [1, 1]} : vector<2x128xf32> to vector<2x32xf32>
    %cst_209 = arith.constant 5.000000e-01 : f32
    %597 = vector.broadcast %cst_209 : f32 to vector<2x32xf32>
    %598 = arith.mulf %597, %596 : vector<2x32xf32>
    %599 = math.tanh %598 : vector<2x32xf32>
    %cst_210 = arith.constant 5.000000e-01 : f32
    %600 = vector.broadcast %cst_210 : f32 to vector<2x32xf32>
    %601 = arith.mulf %600, %599 : vector<2x32xf32>
    %cst_211 = arith.constant 5.000000e-01 : f32
    %602 = vector.broadcast %cst_211 : f32 to vector<2x32xf32>
    %603 = arith.addf %601, %602 : vector<2x32xf32>
    %604 = arith.mulf %593, %532 : vector<2x32xf32>
    %605 = arith.mulf %585, %595 : vector<2x32xf32>
    %606 = arith.addf %604, %605 : vector<2x32xf32>
    %607 = math.tanh %606 : vector<2x32xf32>
    %608 = arith.mulf %603, %607 : vector<2x32xf32>
    %c7_212 = arith.constant 7 : index
    %c0_213 = arith.constant 0 : index
    %c0_214 = arith.constant 0 : index
    %609 = vector.load %arg15[%c7_212, %c0_213, %c0_214] : memref<8x2x32xf32, #tpu.memory_space<vmem>>, vector<1x2x32xf32>
    %610 = vector.shape_cast %609 : vector<1x2x32xf32> to vector<2x32xf32>
    %611 = vector.shape_cast %608 : vector<2x32xf32> to vector<1x2x32xf32>
    tpu.vector_store %arg15[%c7_212, %c0_213, %c0_214], %611 {strides = array<i32>} : memref<8x2x32xf32, #tpu.memory_space<vmem>>, vector<1x2x32xf32>,
    %c0_215 = arith.constant 0 : index
    %c0_216 = arith.constant 0 : index
    %612 = vector.load %arg10[%c0_215, %c0_216] : memref<2x128xf32, #tpu.memory_space<vmem>>, vector<2x128xf32>
    tpu.vector_store %arg10[%c0_215, %c0_216], %575 {strides = array<i32>} : memref<2x128xf32, #tpu.memory_space<vmem>>, vector<2x128xf32>,
    %c0_217 = arith.constant 0 : index
    %c0_218 = arith.constant 0 : index
    %613 = vector.load %arg11[%c0_217, %c0_218] : memref<2x32xf32, #tpu.memory_space<vmem>>, vector<2x32xf32>
    tpu.vector_store %arg11[%c0_217, %c0_218], %569 {strides = array<i32>} : memref<2x32xf32, #tpu.memory_space<vmem>>, vector<2x32xf32>,
    %c0_219 = arith.constant 0 : index
    %c0_220 = arith.constant 0 : index
    %614 = vector.load %arg12[%c0_219, %c0_220] : memref<2x32xf32, #tpu.memory_space<vmem>>, vector<2x32xf32>
    tpu.vector_store %arg12[%c0_219, %c0_220], %608 {strides = array<i32>} : memref<2x32xf32, #tpu.memory_space<vmem>>, vector<2x32xf32>,
    %c0_221 = arith.constant 0 : index
    %c0_222 = arith.constant 0 : index
    %615 = vector.load %arg13[%c0_221, %c0_222] : memref<2x32xf32, #tpu.memory_space<vmem>>, vector<2x32xf32>
    tpu.vector_store %arg13[%c0_221, %c0_222], %606 {strides = array<i32>} : memref<2x32xf32, #tpu.memory_space<vmem>>, vector<2x32xf32>,
    %c0_223 = arith.constant 0 : index
    %c0_224 = arith.constant 0 : index
    %c0_225 = arith.constant 0 : index
    %616 = vector.load %arg15[%c0_223, %c0_224, %c0_225] : memref<8x2x32xf32, #tpu.memory_space<vmem>>, vector<8x2x32xf32>
    %617 = vector.shape_cast %616 : vector<8x2x32xf32> to vector<16x32xf32>
    %618 = arith.truncf %617 : vector<16x32xf32> to vector<16x32xbf16>
    %c0_226 = arith.constant 0 : index
    %c0_227 = arith.constant 0 : index
    %619 = vector.load %arg7[%c0_226, %c0_227] : memref<32x4xbf16, #tpu.memory_space<vmem>>, vector<32x4xbf16>
    %cst_228 = arith.constant dense<0.000000e+00> : vector<16x4xf32>
    %620 = tpu.matmul %618, %619, %cst_228 {dimension_numbers = #tpu.dot_dimension_numbers<[1], [0], [0], [1], [0, 0, 1, 1], [], []>} : vector<16x32xbf16>, vector<32x4xbf16>, vector<16x4xf32> -> vector<16x4xf32>
    %c0_229 = arith.constant 0 : index
    %c0_230 = arith.constant 0 : index
    %621 = vector.load %arg8[%c0_229, %c0_230] : memref<1x4xf32, #tpu.memory_space<vmem>>, vector<1x4xf32>
    %622 = vector.broadcast %621 : vector<1x4xf32> to vector<16x4xf32>
    %623 = arith.addf %620, %622 : vector<16x4xf32>
    %624 = vector.shape_cast %623 : vector<16x4xf32> to vector<8x2x4xf32>
    %c0_231 = arith.constant 0 : index
    %c0_232 = arith.constant 0 : index
    %c0_233 = arith.constant 0 : index
    %625 = vector.load %arg9[%c0_231, %c0_232, %c0_233] : memref<8x2x4xf32, #tpu.memory_space<vmem>>, vector<8x2x4xf32>
    tpu.vector_store %arg9[%c0_231, %c0_232, %c0_233], %624 {strides = array<i32>} : memref<8x2x4xf32, #tpu.memory_space<vmem>>, vector<8x2x4xf32>,
    return
  }
  func.func @transform_0(%arg0: i32, %arg1: i32) -> (i32, i32, i32) {
    %c0_i32 = arith.constant 0 : i32
    %c0_i32_0 = arith.constant 0 : i32
    return %arg1, %arg0, %c0_i32 : i32, i32, i32
  }
  func.func @transform_1(%arg0: i32, %arg1: i32) -> (i32, i32) {
    %c0_i32 = arith.constant 0 : i32
    %c0_i32_0 = arith.constant 0 : i32
    %c0_i32_1 = arith.constant 0 : i32
    return %c0_i32, %c0_i32_0 : i32, i32
  }
  func.func @transform_2(%arg0: i32, %arg1: i32) -> (i32, i32) {
    %c0_i32 = arith.constant 0 : i32
    %c0_i32_0 = arith.constant 0 : i32
    %c0_i32_1 = arith.constant 0 : i32
    return %c0_i32, %c0_i32_0 : i32, i32
  }
  func.func @transform_3(%arg0: i32, %arg1: i32) -> (i32, i32) {
    %c0_i32 = arith.constant 0 : i32
    %c0_i32_0 = arith.constant 0 : i32
    %c0_i32_1 = arith.constant 0 : i32
    return %c0_i32, %c0_i32_0 : i32, i32
  }
  func.func @transform_4(%arg0: i32, %arg1: i32) -> (i32, i32) {
    %c0_i32 = arith.constant 0 : i32
    %c0_i32_0 = arith.constant 0 : i32
    %c0_i32_1 = arith.constant 0 : i32
    return %c0_i32, %c0_i32_0 : i32, i32
  }
  func.func @transform_5(%arg0: i32, %arg1: i32) -> (i32, i32) {
    %c0_i32 = arith.constant 0 : i32
    %c0_i32_0 = arith.constant 0 : i32
    %c0_i32_1 = arith.constant 0 : i32
    return %c0_i32, %c0_i32_0 : i32, i32
  }
  func.func @transform_6(%arg0: i32, %arg1: i32) -> (i32, i32) {
    %c0_i32 = arith.constant 0 : i32
    %c0_i32_0 = arith.constant 0 : i32
    %c0_i32_1 = arith.constant 0 : i32
    return %c0_i32, %c0_i32_0 : i32, i32
  }
  func.func @transform_7(%arg0: i32, %arg1: i32) -> (i32, i32, i32) {
    %c0_i32 = arith.constant 0 : i32
    %c0_i32_0 = arith.constant 0 : i32
    return %arg1, %arg0, %c0_i32 : i32, i32, i32
  }
}

</mosaic_0001>

<bundles_post_ra>
// kernel: lstm_rnn_forward.1
= control target key start
LH: loop header
LB: loop body
LE: loop exit
PB: predicated region body
PF: predicated region fallthrough
CT: control target
= control target key end

     0   :  { %vm113_vm0 = vcmask 1043456   ;;  %v1493_v0 = vmov 0.0   ;;  %vm1494_vm1 = vmmov 0   ;;  %v1495_v4 = vmov 1966171168   ;;  %s1498_s19 = smov 32   ;;  %s1896_s1 = inlined_call_operand.vmem [shape: bf16[8,128], index: 1, kind: input, shape index: {}]   ;;  %s1897_s0 = inlined_call_operand.vmem [shape: bf16[8,2,8], index: 0, kind: input, shape index: {}]   ;;  %s1898_s2 = inlined_call_operand.vmem [shape: f32[1,128], index: 2, kind: input, shape index: {}]   ;;  %s1899_s3 = inlined_call_operand.vmem [shape: bf16[64,256], index: 3, kind: input, shape index: {}]   ;;  %s1900_s4 = inlined_call_operand.vmem [shape: f32[1,128], index: 4, kind: input, shape index: {}]   ;;  %s1901_s5 = inlined_call_operand.vmem [shape: bf16[32,4], index: 5, kind: input, shape index: {}]   ;;  %s1902_s6 = inlined_call_operand.vmem [shape: f32[1,4], index: 6, kind: input, shape index: {}]   ;;  %s1903_s7 = inlined_call_operand.vmem [shape: f32[8,2,4], index: 7, kind: output, shape index: {}]  }
   0x1   :  { %31 = vst [vmem:[#allocation2] sm:$0x3] %v1493_v0  ;;  %1356 = vmatprep.subr.bf16.mxu0 %v1493_v0  ;;  %v44_v1 = vld [vmem:[%s1896_s1] sm:$0xf]  ;;  %1358 = vmatprep.mubr.msk.bf16.mxu0 %vm1494_vm1, %v1493_v0  ;;  %v65_v5 = vunpack.c.l.s4 %v1495_v4  ;;  %v67_v6 = vlaneseq  ;;  %v40_v10 = vld [vmem:[%s1897_s0 + $0x4] sm:$0x1] }
   0x2   :  { %v36_v2 = vld [vmem:[%s1897_s0] sm:$0x1]  ;;  %v37_v3 = vld [vmem:[%s1897_s0 + $0x1] sm:$0x1]  ;;  %v115_v7 = vsel %vm113_vm0, %v44_v1, 0  ;;  %vm109_vm2 = vcmask 64512  }
   0x3   :  { %v38_v8 = vld [vmem:[%s1897_s0 + $0x2] sm:$0x1]  ;;  %v39_v9 = vld [vmem:[%s1897_s0 + $0x3] sm:$0x1]  ;;  %1357 = vmatpush3.bf16.msra.mxu0 %v115_v7  ;;  %v41_v11 = vld [vmem:[%s1897_s0 + $0x5] sm:$0x1]  ;;  %v66_v13 = vunpack.c.0.s8 %v65_v5  ;;  %v60_v15 = vcombine.low %v36_v2, %v37_v3 }
   0x4   :  { %v42_v12 = vld [vmem:[%s1897_s0 + $0x6] sm:$0x1]  ;;  %v43_v14 = vld [vmem:[%s1897_s0 + $0x7] sm:$0x1]  ;;  %v61_v16 = vcombine.low %v38_v8, %v39_v9  ;;  %v62_v17 = vcombine.low %v40_v10, %v41_v11  ;;  %v68_v18 = vshrl.u32 %v67_v6, 7  ;;  %vm32_vm3 = vcmask 254976  }
   0x5   :  { %v63_v19 = vcombine.low %v42_v12, %v43_v14  ;;  %33 = vst.msk [vmem:[#allocation3] sm:$0x3] %vm32_vm3, %v1493_v0  ;;  %34 = vst.msk [vmem:[#allocation4] sm:$0x3] %vm32_vm3, %v1493_v0  ;;  %v1496_v30 = vmov 1983009808  }
   0x6   :  { %v69_v20 = vsub.s32 %v66_v13, %v68_v18  ;;  %35 = vst.msk [vmem:[#allocation5] sm:$0x3] %vm32_vm3, %v1493_v0  ;;  %v162_v31 = vunpack.c.l.s4 %v1496_v30  ;;  %v1324_v33 = vld [vmem:[%s1898_s2] ss:$0 sm:$0xff]  ;;  %s1497_s2 = smov 64   ;;  %v1499_v12 = vmov 0  }
   0x7   :  { %v1596_v3 = vld [vmem:[%s1899_s3 + $0x4] ss:$8 sps:$4 sm:$0xff]   ;;  %v1601_v4 = vld [vmem:[%s1899_s3] ss:$8 sps:$4 sm:$0xff]   ;;  %v1607_v5 = vld [vmem:[%s1899_s3 + $0x14] ss:$8 sps:$4 sm:$0xff]   ;;  %344 = vmatprep.mubr.bf16.mxu1 %v1499_v12 }
   0x8   :  { %v70_v21 = vrot.slane %v60_v15, %v69_v20  ;;  %v77_v22 = vrot.slane %v61_v16, %v69_v20  ;;  %v84_v23 = vrot.slane %v62_v17, %v69_v20  ;;  %v91_v24 = vrot.slane %v63_v19, %v69_v20  ;;  %v225_v50 = vld [vmem:[#allocation2] sm:$0x3]  ;;  %312 = vmatprep.subr.bf16.mxu1 %v1596_v3  ;;  %v1614_v6 = vld [vmem:[%s1899_s3 + $0x10] ss:$8 sps:$4 sm:$0xff]   ;;  %v1621_v7 = vld [vmem:[%s1899_s3 + $0x24] ss:$8 sps:$4 sm:$0xff]  }
   0x9   :  { %v163_v32 = vunpack.c.0.s8 %v162_v31  ;;  %423 = vmatprep.subr.bf16.mxu0 %v1596_v3  ;;  %313 = vmatpush1.bf16.msra.mxu1 %v1601_v4  ;;  %v1628_v9 = vld [vmem:[%s1899_s3 + $0x20] ss:$8 sps:$4 sm:$0xff]   ;;  %v1639_v10 = vld [vmem:[%s1899_s3 + $0x34] ss:$8 sps:$4 sm:$0xff]   ;;  %v1644_v11 = vld [vmem:[%s1899_s3 + $0x30] ss:$8 sps:$4 sm:$0xff]  }
   0xa   :  { %v92_v25 = vcombine.low %v70_v21, %v77_v22  ;;  %v93_v26 = vcombine.low %v84_v23, %v91_v24  ;;  %314 = vmatprep.subr.bf16.mxu1 %v1607_v5  ;;  %vm265_vm4 = vcmask 261120   ;;  %vm308_vm5 = vcmask 523264   ;;  %v1669_v22 = vld [vmem:[%s1900_s4] ss:$0 sm:$0xff]  ;;  %s1500_s4 = smov 96  }
   0xb   :  { %v1581_v34 = vsub.s32 %v163_v32, %v68_v18  ;;  %vm1311_vm6 = vcmask 25600  }
   0xc   :  { %v100_v27 = vrot.slane %v92_v25, %v69_v20  ;;  %v107_v28 = vrot.slane %v93_v26, %v69_v20  ;;  %v226_v55 = vld [vmem:[#allocation3] sm:$0x3]  ;;  %v227_v13 = vld [vmem:[#allocation4] sm:$0x3] }
   0xd   :  { %315 = vmatpush1.bf16.msra.mxu1 %v1614_v6  ;;  %v228_v32 = vld [vmem:[#allocation5] sm:$0x3] }
   0xe   :  { %v108_v29 = vcombine.low %v100_v27, %v107_v28  ;;  %316 = vmatprep.subr.bf16.mxu1 %v1621_v7 }
  0x10   :  { %1359 = vmatmul.mubr.msk.bf16.vlgmr.msra.gmra.mrb[0].mxu0 %vm109_vm2, %v108_v29 }
  0x11   :  { %424 = vmatpush1.bf16.msra.mxu0 %v1601_v4  ;;  %317 = vmatpush1.bf16.msra.mxu1 %v1628_v9 }
  0x12   :  { %425 = vmatprep.subr.bf16.mxu0 %v1607_v5  ;;  %318 = vmatprep.subr.bf16.mxu1 %v1639_v10 }
  0x13   :  { %455 = vmatprep.mubr.bf16.mxu0 %v1499_v12 }
  0x15   :  { %426 = vmatpush1.bf16.msra.mxu0 %v1614_v6  ;;  %319 = vmatpush1.bf16.msra.mxu1 %v1644_v11 }
  0x16   :  { %427 = vmatprep.subr.bf16.mxu0 %v1621_v7  ;;  %530 = vmatprep.subr.bf16.mxu1 %v1596_v3 }
  0x19   :  { %428 = vmatpush1.bf16.msra.mxu0 %v1628_v9 }
  0x1a   :  { %429 = vmatprep.subr.bf16.mxu0 %v1639_v10 }
  0x1d   :  { %430 = vmatpush1.bf16.msra.mxu0 %v1644_v11 }
  0x1e   :  { %637 = vmatprep.subr.bf16.mxu0 %v1596_v3 }
  0xe3   :  { %v151_v35 = vpop.f32.mrb[0].mxu0 }
  0xe4   :  { %v152_v36 = vadd.f32 %v1324_v33, %v151_v35  ;;  %v1360_v37 = vpop.f32.mrb[1].mxu0 }
  0xe5   :  { %v154_v38 = vpop.f32.mrb[2].mxu0 }
  0xe6   :  { %v160_v39 = vcombine.high %v152_v36, %v152_v36  ;;  %v167_v40 = vrot.slane %v152_v36, %v1581_v34  ;;  %1326 = vst.sshfl [vmem:[#allocation6] sm:$0x3 pattern:$0x76325410] %v152_v36  ;;  %v155_v41 = vadd.f32 %v1324_v33, %v154_v38  ;;  %v1361_v42 = vpop.f32.mrb[3].mxu0 }
  0xe8   :  { %v174_v43 = vrot.slane %v160_v39, %v1581_v34  ;;  %v175_v44 = vcombine.high %v167_v40, %v167_v40  ;;  %1327 = vst.sshfl [vmem:[#allocation6 + $0x4] sm:$0x3 pattern:$0x76325410] %v160_v39  ;;  %v177_v45 = vcombine.high %v155_v41, %v155_v41  ;;  %v184_v46 = vrot.slane %v155_v41, %v1581_v34 }
  0xe9   :  { %1328 = vst.sshfl [vmem:[#allocation6 + $0x8] sm:$0x3 pattern:$0x76325410] %v155_v41 }
  0xea   :  { %v176_v47 = vcombine.high %v174_v43, %v174_v43  ;;  %203 = vst [vmem:[#allocation6 + $0x2] sm:$0x3] %v175_v44  ;;  %v191_v48 = vrot.slane %v177_v45, %v1581_v34  ;;  %v192_v49 = vcombine.high %v184_v46, %v184_v46  ;;  %1329 = vst.sshfl [vmem:[#allocation6 + $0xc] sm:$0x3 pattern:$0x76325410] %v177_v45 }
  0xec   :  { %205 = vst [vmem:[#allocation6 + $0x6] sm:$0x3] %v176_v47  ;;  %v193_v51 = vcombine.high %v191_v48, %v191_v48  ;;  %207 = vst [vmem:[#allocation6 + $0xa] sm:$0x3] %v192_v49 }
  0xed   :  { %v229_v52 = vld [vmem:[#allocation6] sm:$0x3] }
  0xee   :  { %209 = vst [vmem:[#allocation6 + $0xe] sm:$0x3] %v193_v51  ;;  %v230_v53 = vadd.f32 %v229_v52, %v225_v50 }
  0xf0   :  { %1397 = vtanh.f32 %v230_v53  ;;  %v231_v56 = vmul.f32 0.5, %v230_v53 }
  0xf1   :  { %v387_v24 = vld [vmem:[#allocation6 + $0x2] sm:$0x3] }
  0xf2   :  { %1399 = vtanh.f32 %v231_v56 }
  0xfa   :  { %v1398_v54 = vpop.eup %1397 }
  0xfb   :  { %242 = vrot.lane.b32.xlu0 %v1398_v54, %s1497_s2 }
  0xfc   :  { %v1400_v57 = vpop.eup %1399 }
  0xfd   :  { %v233_v58 = vmul.f32 0.5, %v1400_v57 }
  0xff   :  { %237 = vrot.lane.b32.xlu0 %v226_v55, %s1498_s19  ;;  %v234_v59 = vadd.f32 0.5, %v233_v58 }
 0x16d   :  { %v243_v60 = vpop.permute.xlu0 %242 }
 0x16e   :  { %v245_v61 = vmul.f32 %v243_v60, %v234_v59 }
 0x170   :  { %247 = vrot.lane.b32.xlu1 %v245_v61, %s1498_s19 }
 0x171   :  { %v238_v62 = vpop.permute.xlu0 %237 }
 0x172   :  { %v240_v63 = vmul.f32 %v238_v62, %v234_v59 }
 0x1e2   :  { %v248_v1 = vpop.permute.xlu1 %247 }
 0x1e3   :  { %v1590_v2 = vadd.f32 %v248_v1, %v240_v63  ;;  %v494_v1 = vld [vmem:[#allocation6 + $0x4] sm:$0x3] }
 0x1e5   :  { %1401 = vtanh.f32 %v1590_v2 }
 0x1ef   :  { %v1402_v8 = vpop.eup %1401 }
 0x1f0   :  { %253 = vrot.lane.b32.xlu1 %v1402_v8, %s1497_s2 }
 0x262   :  { %v254_v14 = vpop.permute.xlu1 %253 }
 0x263   :  { %v256_v15 = vmul.f32 %v254_v14, %v234_v59 }
 0x265   :  { %v1378_v16 = vpack.i.bf16 %v227_v13, %v256_v15 }
 0x267   :  { %1379 = vrot.lane.b32.xlu0 %v1378_v16, %s1498_s19 }
 0x2d9   :  { %v1380_v17 = vpop.permute.xlu0 %1379 }
 0x2da   :  { %v1382_v18 = vunpack.i.h.bf16 %v1380_v17  ;;  %v1381_v19 = vunpack.i.l.bf16 %v1380_v17 }
 0x2dc   :  { %v266_v20 = vsel %vm265_vm4, %v1381_v19, %v1382_v18 }
 0x2dd   :  { %v267_v21 = vpack.c.bf16 %v266_v20, %v266_v20 }
 0x2df   :  { %1339 = vmatmul.mubr.msk.bf16.vlgmr.msra.gmra.mrb[0].mxu1 %vm308_vm5, %v267_v21 }
 0x2e0   :  { %531 = vmatpush1.bf16.msra.mxu1 %v1601_v4  ;;  %562 = vmatprep.mubr.bf16.mxu1 %v1499_v12 }
 0x2e1   :  { %532 = vmatprep.subr.bf16.mxu1 %v1607_v5 }
 0x2e4   :  { %533 = vmatpush1.bf16.msra.mxu1 %v1614_v6 }
 0x2e5   :  { %534 = vmatprep.subr.bf16.mxu1 %v1621_v7 }
 0x2e8   :  { %535 = vmatpush1.bf16.msra.mxu1 %v1628_v9 }
 0x2e9   :  { %536 = vmatprep.subr.bf16.mxu1 %v1639_v10 }
 0x2ec   :  { %537 = vmatpush1.bf16.msra.mxu1 %v1644_v11 }
 0x2ed   :  { %744 = vmatprep.subr.bf16.mxu1 %v1596_v3 }
 0x3b2   :  { %v346_v23 = vpop.f32.mrb[0].mxu1 }
 0x3b3   :  { %v388_v25 = vadd.f32 %v387_v24, %v346_v23  ;;  %v348_v26 = vpop.f32.mrb[1].mxu1 }
 0x3b4   :  { %v353_v27 = vadd.f32 %v1669_v22, %v348_v26  ;;  %v350_v28 = vpop.f32.mrb[2].mxu1 }
 0x3b5   :  { %1403 = vtanh.f32 %v388_v25  ;;  %v351_v29 = vpop.f32.mrb[3].mxu1  ;;  %v389_v33 = vmul.f32 0.5, %v388_v25 }
 0x3b6   :  { %1405 = vtanh.f32 %v353_v27  ;;  %v354_v35 = vmul.f32 0.5, %v353_v27 }
 0x3b7   :  { %1407 = vtanh.f32 %v389_v33 }
 0x3b8   :  { %1409 = vtanh.f32 %v354_v35 }
 0x3bf   :  { %v1404_v30 = vpop.eup %1403 }
 0x3c0   :  { %v1406_v31 = vpop.eup %1405  ;;  %396 = vrot.lane.b32.xlu0 %v1404_v30, %s1497_s2 }
 0x3c1   :  { %365 = vrot.lane.b32.xlu1 %v1406_v31, %s1497_s2  ;;  %v1408_v36 = vpop.eup %1407 }
 0x3c2   :  { %v1410_v37 = vpop.eup %1409  ;;  %v391_v38 = vmul.f32 0.5, %v1408_v36 }
 0x3c3   :  { %v356_v39 = vmul.f32 0.5, %v1410_v37 }
 0x3c4   :  { %v392_v40 = vadd.f32 0.5, %v391_v38 }
 0x3c5   :  { %360 = vrot.lane.b32.xlu1 %v228_v32, %s1498_s19  ;;  %v357_v42 = vadd.f32 0.5, %v356_v39 }
 0x3c6   :  { %v394_v47 = vmul.f32 %v392_v40, %v1590_v2 }
 0x432   :  { %v397_v41 = vpop.permute.xlu0 %396 }
 0x433   :  { %v399_v43 = vmul.f32 %v397_v41, %v392_v40  ;;  %v366_v44 = vpop.permute.xlu1 %365 }
 0x434   :  { %v368_v45 = vmul.f32 %v366_v44, %v357_v42 }
 0x435   :  { %401 = vrot.lane.b32.xlu1 %v399_v43, %s1498_s19 }
 0x436   :  { %370 = vrot.lane.b32.xlu0 %v368_v45, %s1498_s19 }
 0x437   :  { %v361_v46 = vpop.permute.xlu1 %360 }
 0x438   :  { %v363_v48 = vmul.f32 %v361_v46, %v357_v42 }
 0x4a7   :  { %v402_v49 = vpop.permute.xlu1 %401 }
 0x4a8   :  { %v404_v50 = vadd.f32 %v402_v49, %v394_v47  ;;  %v371_v51 = vpop.permute.xlu0 %370  ;;  %v601_v49 = vld [vmem:[#allocation6 + $0x6] sm:$0x3] }
 0x4a9   :  { %v373_v52 = vadd.f32 %v371_v51, %v363_v48 }
 0x4aa   :  { %1411 = vtanh.f32 %v404_v50 }
 0x4ab   :  { %1413 = vtanh.f32 %v373_v52 }
 0x4b4   :  { %v1412_v53 = vpop.eup %1411 }
 0x4b5   :  { %v1414_v54 = vpop.eup %1413  ;;  %407 = vrot.lane.b32.xlu1 %v1412_v53, %s1497_s2 }
 0x4b6   :  { %376 = vrot.lane.b32.xlu0 %v1414_v54, %s1497_s2 }
 0x527   :  { %v408_v55 = vpop.permute.xlu1 %407 }
 0x528   :  { %v410_v56 = vmul.f32 %v408_v55, %v392_v40  ;;  %v377_v57 = vpop.permute.xlu0 %376 }
 0x529   :  { %v1680_v58 = vmul.f32 %v377_v57, %v357_v42 }
 0x52a   :  { %412 = vrot.lane.b32.xlu0 %v410_v56, %s1498_s19 }
 0x52b   :  { %415 = vrot.lane.b32.xlu1 %v1680_v58, %s1497_s2 }
 0x59c   :  { %v413_v59 = vpop.permute.xlu0 %412 }
 0x59d   :  { %v416_v60 = vpop.permute.xlu1 %415 }
 0x59e   :  { %v418_v61 = vsel %vm265_vm4, %v413_v59, %v416_v60 }
 0x59f   :  { %v419_v62 = vpack.c.bf16 %v418_v61, %v418_v61 }
 0x5a1   :  { %1340 = vmatmul.mubr.msk.bf16.vlgmr.msra.gmra.mrb[4].mxu0 %vm308_vm5, %v419_v62 }
 0x5a2   :  { %638 = vmatpush1.bf16.msra.mxu0 %v1601_v4  ;;  %669 = vmatprep.mubr.bf16.mxu0 %v1499_v12 }
 0x5a3   :  { %639 = vmatprep.subr.bf16.mxu0 %v1607_v5 }
 0x5a6   :  { %640 = vmatpush1.bf16.msra.mxu0 %v1614_v6 }
 0x5a7   :  { %641 = vmatprep.subr.bf16.mxu0 %v1621_v7 }
 0x5aa   :  { %642 = vmatpush1.bf16.msra.mxu0 %v1628_v9 }
 0x5ab   :  { %643 = vmatprep.subr.bf16.mxu0 %v1639_v10 }
 0x5ae   :  { %644 = vmatpush1.bf16.msra.mxu0 %v1644_v11 }
 0x5af   :  { %851 = vmatprep.subr.bf16.mxu0 %v1596_v3 }
 0x674   :  { %v457_v63 = vpop.f32.mrb[4].mxu0 }
 0x675   :  { %v495_v2 = vadd.f32 %v494_v1, %v457_v63  ;;  %v459_v8 = vpop.f32.mrb[5].mxu0 }
 0x676   :  { %v464_v13 = vadd.f32 %v1669_v22, %v459_v8  ;;  %v461_v14 = vpop.f32.mrb[6].mxu0 }
 0x677   :  { %1415 = vtanh.f32 %v495_v2  ;;  %v462_v15 = vpop.f32.mrb[7].mxu0  ;;  %v496_v18 = vmul.f32 0.5, %v495_v2 }
 0x678   :  { %1417 = vtanh.f32 %v464_v13  ;;  %v465_v19 = vmul.f32 0.5, %v464_v13 }
 0x679   :  { %1419 = vtanh.f32 %v496_v18 }
 0x67a   :  { %1421 = vtanh.f32 %v465_v19 }
 0x681   :  { %v1416_v16 = vpop.eup %1415 }
 0x682   :  { %v1418_v17 = vpop.eup %1417  ;;  %503 = vrot.lane.b32.xlu1 %v1416_v16, %s1497_s2 }
 0x683   :  { %472 = vrot.lane.b32.xlu0 %v1418_v17, %s1497_s2  ;;  %v1420_v20 = vpop.eup %1419 }
 0x684   :  { %v1422_v21 = vpop.eup %1421  ;;  %v498_v23 = vmul.f32 0.5, %v1420_v20 }
 0x685   :  { %v467_v24 = vmul.f32 0.5, %v1422_v21 }
 0x686   :  { %v499_v25 = vadd.f32 0.5, %v498_v23 }
 0x687   :  { %v468_v27 = vadd.f32 0.5, %v467_v24 }
 0x688   :  { %v501_v31 = vmul.f32 %v499_v25, %v404_v50 }
 0x689   :  { %v470_v33 = vmul.f32 %v468_v27, %v373_v52 }
 0x6f4   :  { %v504_v26 = vpop.permute.xlu1 %503 }
 0x6f5   :  { %v506_v28 = vmul.f32 %v504_v26, %v499_v25  ;;  %v473_v29 = vpop.permute.xlu0 %472 }
 0x6f6   :  { %v475_v30 = vmul.f32 %v473_v29, %v468_v27 }
 0x6f7   :  { %508 = vrot.lane.b32.xlu1 %v506_v28, %s1498_s19 }
 0x6f8   :  { %477 = vrot.lane.b32.xlu0 %v475_v30, %s1498_s19 }
 0x769   :  { %v509_v32 = vpop.permute.xlu1 %508 }
 0x76a   :  { %v511_v35 = vadd.f32 %v509_v32, %v501_v31  ;;  %v478_v36 = vpop.permute.xlu0 %477 }
 0x76b   :  { %v480_v37 = vadd.f32 %v478_v36, %v470_v33 }
 0x76c   :  { %1423 = vtanh.f32 %v511_v35 }
 0x76d   :  { %1425 = vtanh.f32 %v480_v37 }
 0x776   :  { %v1424_v38 = vpop.eup %1423 }
 0x777   :  { %v1426_v39 = vpop.eup %1425  ;;  %514 = vrot.lane.b32.xlu1 %v1424_v38, %s1497_s2 }
 0x778   :  { %483 = vrot.lane.b32.xlu0 %v1426_v39, %s1497_s2 }
 0x7e9   :  { %v515_v40 = vpop.permute.xlu1 %514 }
 0x7ea   :  { %v517_v41 = vmul.f32 %v515_v40, %v499_v25  ;;  %v484_v42 = vpop.permute.xlu0 %483 }
 0x7eb   :  { %v1703_v43 = vmul.f32 %v484_v42, %v468_v27 }
 0x7ec   :  { %519 = vrot.lane.b32.xlu0 %v517_v41, %s1498_s19 }
 0x7ed   :  { %522 = vrot.lane.b32.xlu1 %v1703_v43, %s1497_s2 }
 0x85e   :  { %v520_v44 = vpop.permute.xlu0 %519 }
 0x85f   :  { %v523_v45 = vpop.permute.xlu1 %522 }
 0x860   :  { %v525_v46 = vsel %vm265_vm4, %v520_v44, %v523_v45 }
 0x861   :  { %v526_v47 = vpack.c.bf16 %v525_v46, %v525_v46 }
 0x863   :  { %1341 = vmatmul.mubr.msk.bf16.vlgmr.msra.gmra.mrb[4].mxu1 %vm308_vm5, %v526_v47 }
 0x864   :  { %745 = vmatpush1.bf16.msra.mxu1 %v1601_v4  ;;  %776 = vmatprep.mubr.bf16.mxu1 %v1499_v12 }
 0x865   :  { %746 = vmatprep.subr.bf16.mxu1 %v1607_v5 }
 0x868   :  { %747 = vmatpush1.bf16.msra.mxu1 %v1614_v6 }
 0x869   :  { %748 = vmatprep.subr.bf16.mxu1 %v1621_v7 }
 0x86c   :  { %749 = vmatpush1.bf16.msra.mxu1 %v1628_v9 }
 0x86d   :  { %750 = vmatprep.subr.bf16.mxu1 %v1639_v10 }
 0x870   :  { %751 = vmatpush1.bf16.msra.mxu1 %v1644_v11 }
 0x871   :  { %958 = vmatprep.subr.bf16.mxu1 %v1596_v3 }
 0x936   :  { %v564_v48 = vpop.f32.mrb[4].mxu1 }
 0x937   :  { %v602_v50 = vadd.f32 %v601_v49, %v564_v48  ;;  %v566_v51 = vpop.f32.mrb[5].mxu1 }
 0x938   :  { %v571_v52 = vadd.f32 %v1669_v22, %v566_v51  ;;  %v568_v53 = vpop.f32.mrb[6].mxu1 }
 0x939   :  { %1427 = vtanh.f32 %v602_v50  ;;  %v569_v54 = vpop.f32.mrb[7].mxu1  ;;  %v603_v57 = vmul.f32 0.5, %v602_v50 }
 0x93a   :  { %1429 = vtanh.f32 %v571_v52  ;;  %v572_v59 = vmul.f32 0.5, %v571_v52 }
 0x93b   :  { %1431 = vtanh.f32 %v603_v57 }
 0x93c   :  { %1433 = vtanh.f32 %v572_v59 }
 0x943   :  { %v1428_v55 = vpop.eup %1427 }
 0x944   :  { %v1430_v56 = vpop.eup %1429  ;;  %610 = vrot.lane.b32.xlu1 %v1428_v55, %s1497_s2 }
 0x945   :  { %579 = vrot.lane.b32.xlu0 %v1430_v56, %s1497_s2  ;;  %v1432_v60 = vpop.eup %1431 }
 0x946   :  { %v1434_v61 = vpop.eup %1433  ;;  %v605_v62 = vmul.f32 0.5, %v1432_v60 }
 0x947   :  { %v574_v63 = vmul.f32 0.5, %v1434_v61 }
 0x948   :  { %v606_v1 = vadd.f32 0.5, %v605_v62 }
 0x949   :  { %v575_v8 = vadd.f32 0.5, %v574_v63 }
 0x94a   :  { %v608_v16 = vmul.f32 %v606_v1, %v511_v35  ;;  %v708_v35 = vld [vmem:[#allocation6 + $0x8] sm:$0x3] }
 0x94b   :  { %v577_v18 = vmul.f32 %v575_v8, %v480_v37 }
 0x9b6   :  { %v611_v2 = vpop.permute.xlu1 %610 }
 0x9b7   :  { %v613_v13 = vmul.f32 %v611_v2, %v606_v1  ;;  %v580_v14 = vpop.permute.xlu0 %579 }
 0x9b8   :  { %v582_v15 = vmul.f32 %v580_v14, %v575_v8 }
 0x9b9   :  { %615 = vrot.lane.b32.xlu1 %v613_v13, %s1498_s19 }
 0x9ba   :  { %584 = vrot.lane.b32.xlu0 %v582_v15, %s1498_s19 }
 0xa2b   :  { %v616_v17 = vpop.permute.xlu1 %615 }
 0xa2c   :  { %v618_v19 = vadd.f32 %v616_v17, %v608_v16  ;;  %v585_v20 = vpop.permute.xlu0 %584 }
 0xa2d   :  { %v587_v21 = vadd.f32 %v585_v20, %v577_v18 }
 0xa2e   :  { %1435 = vtanh.f32 %v618_v19 }
 0xa2f   :  { %1437 = vtanh.f32 %v587_v21 }
 0xa38   :  { %v1436_v23 = vpop.eup %1435 }
 0xa39   :  { %v1438_v24 = vpop.eup %1437  ;;  %621 = vrot.lane.b32.xlu1 %v1436_v23, %s1497_s2 }
 0xa3a   :  { %590 = vrot.lane.b32.xlu0 %v1438_v24, %s1497_s2 }
 0xaab   :  { %v622_v25 = vpop.permute.xlu1 %621 }
 0xaac   :  { %v624_v26 = vmul.f32 %v622_v25, %v606_v1  ;;  %v591_v27 = vpop.permute.xlu0 %590 }
 0xaad   :  { %v1726_v28 = vmul.f32 %v591_v27, %v575_v8 }
 0xaae   :  { %626 = vrot.lane.b32.xlu0 %v624_v26, %s1498_s19 }
 0xaaf   :  { %629 = vrot.lane.b32.xlu1 %v1726_v28, %s1497_s2 }
 0xb20   :  { %v627_v29 = vpop.permute.xlu0 %626 }
 0xb21   :  { %v630_v30 = vpop.permute.xlu1 %629 }
 0xb22   :  { %v632_v31 = vsel %vm265_vm4, %v627_v29, %v630_v30 }
 0xb23   :  { %v633_v32 = vpack.c.bf16 %v632_v31, %v632_v31 }
 0xb25   :  { %1342 = vmatmul.mubr.msk.bf16.vlgmr.msra.gmra.mrb[8].mxu0 %vm308_vm5, %v633_v32 }
 0xb26   :  { %852 = vmatpush1.bf16.msra.mxu0 %v1601_v4  ;;  %883 = vmatprep.mubr.bf16.mxu0 %v1499_v12 }
 0xb27   :  { %853 = vmatprep.subr.bf16.mxu0 %v1607_v5 }
 0xb2a   :  { %854 = vmatpush1.bf16.msra.mxu0 %v1614_v6 }
 0xb2b   :  { %855 = vmatprep.subr.bf16.mxu0 %v1621_v7 }
 0xb2e   :  { %856 = vmatpush1.bf16.msra.mxu0 %v1628_v9 }
 0xb2f   :  { %857 = vmatprep.subr.bf16.mxu0 %v1639_v10 }
 0xb32   :  { %858 = vmatpush1.bf16.msra.mxu0 %v1644_v11 }
 0xb33   :  { %1065 = vmatprep.subr.bf16.mxu0 %v1596_v3 }
 0xbf8   :  { %v671_v33 = vpop.f32.mrb[8].mxu0 }
 0xbf9   :  { %v709_v36 = vadd.f32 %v708_v35, %v671_v33  ;;  %v673_v37 = vpop.f32.mrb[9].mxu0 }
 0xbfa   :  { %v678_v38 = vadd.f32 %v1669_v22, %v673_v37  ;;  %v675_v39 = vpop.f32.mrb[10].mxu0 }
 0xbfb   :  { %1439 = vtanh.f32 %v709_v36  ;;  %v676_v40 = vpop.f32.mrb[11].mxu0  ;;  %v710_v44 = vmul.f32 0.5, %v709_v36 }
 0xbfc   :  { %1441 = vtanh.f32 %v678_v38  ;;  %v679_v45 = vmul.f32 0.5, %v678_v38 }
 0xbfd   :  { %1443 = vtanh.f32 %v710_v44 }
 0xbfe   :  { %1445 = vtanh.f32 %v679_v45 }
 0xc05   :  { %v1440_v41 = vpop.eup %1439 }
 0xc06   :  { %v1442_v42 = vpop.eup %1441  ;;  %717 = vrot.lane.b32.xlu1 %v1440_v41, %s1497_s2 }
 0xc07   :  { %686 = vrot.lane.b32.xlu0 %v1442_v42, %s1497_s2  ;;  %v1444_v3 = vpop.eup %1443 }
 0xc08   :  { %v1446_v46 = vpop.eup %1445  ;;  %v712_v47 = vmul.f32 0.5, %v1444_v3 }
 0xc09   :  { %v681_v48 = vmul.f32 0.5, %v1446_v46 }
 0xc0a   :  { %v713_v49 = vadd.f32 0.5, %v712_v47 }
 0xc0b   :  { %v682_v51 = vadd.f32 0.5, %v681_v48 }
 0xc0c   :  { %v715_v55 = vmul.f32 %v713_v49, %v618_v19  ;;  %v815_v19 = vld [vmem:[#allocation6 + $0xa] sm:$0x3] }
 0xc0d   :  { %v684_v57 = vmul.f32 %v682_v51, %v587_v21 }
 0xc78   :  { %v718_v50 = vpop.permute.xlu1 %717 }
 0xc79   :  { %v720_v52 = vmul.f32 %v718_v50, %v713_v49  ;;  %v687_v53 = vpop.permute.xlu0 %686 }
 0xc7a   :  { %v689_v54 = vmul.f32 %v687_v53, %v682_v51 }
 0xc7b   :  { %722 = vrot.lane.b32.xlu1 %v720_v52, %s1498_s19 }
 0xc7c   :  { %691 = vrot.lane.b32.xlu0 %v689_v54, %s1498_s19 }
 0xced   :  { %v723_v56 = vpop.permute.xlu1 %722 }
 0xcee   :  { %v725_v59 = vadd.f32 %v723_v56, %v715_v55  ;;  %v692_v60 = vpop.permute.xlu0 %691 }
 0xcef   :  { %v694_v61 = vadd.f32 %v692_v60, %v684_v57  ;;  %v922_v60 = vld [vmem:[#allocation6 + $0xc] sm:$0x3] }
 0xcf0   :  { %1447 = vtanh.f32 %v725_v59 }
 0xcf1   :  { %1449 = vtanh.f32 %v694_v61 }
 0xcfa   :  { %v1448_v62 = vpop.eup %1447 }
 0xcfb   :  { %v1450_v63 = vpop.eup %1449  ;;  %728 = vrot.lane.b32.xlu1 %v1448_v62, %s1497_s2 }
 0xcfc   :  { %697 = vrot.lane.b32.xlu0 %v1450_v63, %s1497_s2 }
 0xd6d   :  { %v729_v1 = vpop.permute.xlu1 %728 }
 0xd6e   :  { %v731_v2 = vmul.f32 %v729_v1, %v713_v49  ;;  %v698_v8 = vpop.permute.xlu0 %697 }
 0xd6f   :  { %v1749_v13 = vmul.f32 %v698_v8, %v682_v51 }
 0xd70   :  { %733 = vrot.lane.b32.xlu0 %v731_v2, %s1498_s19 }
 0xd71   :  { %736 = vrot.lane.b32.xlu1 %v1749_v13, %s1497_s2 }
 0xde2   :  { %v734_v14 = vpop.permute.xlu0 %733 }
 0xde3   :  { %v737_v15 = vpop.permute.xlu1 %736 }
 0xde4   :  { %v739_v16 = vsel %vm265_vm4, %v734_v14, %v737_v15 }
 0xde5   :  { %v740_v17 = vpack.c.bf16 %v739_v16, %v739_v16 }
 0xde7   :  { %1343 = vmatmul.mubr.msk.bf16.vlgmr.msra.gmra.mrb[8].mxu1 %vm308_vm5, %v740_v17 }
 0xde8   :  { %959 = vmatpush1.bf16.msra.mxu1 %v1601_v4  ;;  %990 = vmatprep.mubr.bf16.mxu1 %v1499_v12 }
 0xde9   :  { %960 = vmatprep.subr.bf16.mxu1 %v1607_v5 }
 0xdec   :  { %961 = vmatpush1.bf16.msra.mxu1 %v1614_v6 }
 0xded   :  { %962 = vmatprep.subr.bf16.mxu1 %v1621_v7 }
 0xdf0   :  { %963 = vmatpush1.bf16.msra.mxu1 %v1628_v9 }
 0xdf1   :  { %964 = vmatprep.subr.bf16.mxu1 %v1639_v10 }
 0xdf4   :  { %965 = vmatpush1.bf16.msra.mxu1 %v1644_v11 }
 0xdf5   :  { %1362 = vmatprep.subr.bf16.mxu1 %v1493_v0 }
 0xeba   :  { %v778_v18 = vpop.f32.mrb[8].mxu1 }
 0xebb   :  { %v816_v20 = vadd.f32 %v815_v19, %v778_v18  ;;  %v780_v21 = vpop.f32.mrb[9].mxu1 }
 0xebc   :  { %v785_v23 = vadd.f32 %v1669_v22, %v780_v21  ;;  %v782_v24 = vpop.f32.mrb[10].mxu1 }
 0xebd   :  { %1451 = vtanh.f32 %v816_v20  ;;  %v783_v25 = vpop.f32.mrb[11].mxu1  ;;  %v817_v29 = vmul.f32 0.5, %v816_v20 }
 0xebe   :  { %1453 = vtanh.f32 %v785_v23  ;;  %v786_v30 = vmul.f32 0.5, %v785_v23 }
 0xebf   :  { %1455 = vtanh.f32 %v817_v29 }
 0xec0   :  { %1457 = vtanh.f32 %v786_v30 }
 0xec7   :  { %v1452_v26 = vpop.eup %1451 }
 0xec8   :  { %v1454_v27 = vpop.eup %1453  ;;  %824 = vrot.lane.b32.xlu1 %v1452_v26, %s1497_s2 }
 0xec9   :  { %793 = vrot.lane.b32.xlu0 %v1454_v27, %s1497_s2  ;;  %v1456_v31 = vpop.eup %1455 }
 0xeca   :  { %v1458_v32 = vpop.eup %1457  ;;  %v819_v33 = vmul.f32 0.5, %v1456_v31 }
 0xecb   :  { %v788_v35 = vmul.f32 0.5, %v1458_v32 }
 0xecc   :  { %v820_v36 = vadd.f32 0.5, %v819_v33 }
 0xecd   :  { %v789_v38 = vadd.f32 0.5, %v788_v35 }
 0xece   :  { %v822_v42 = vmul.f32 %v820_v36, %v725_v59 }
 0xecf   :  { %v791_v45 = vmul.f32 %v789_v38, %v694_v61 }
 0xf3a   :  { %v825_v37 = vpop.permute.xlu1 %824 }
 0xf3b   :  { %v827_v39 = vmul.f32 %v825_v37, %v820_v36  ;;  %v794_v40 = vpop.permute.xlu0 %793 }
 0xf3c   :  { %v796_v41 = vmul.f32 %v794_v40, %v789_v38 }
 0xf3d   :  { %829 = vrot.lane.b32.xlu1 %v827_v39, %s1498_s19  ;;  %v1029_v39 = vld [vmem:[#allocation6 + $0xe] sm:$0x3] }
 0xf3e   :  { %798 = vrot.lane.b32.xlu0 %v796_v41, %s1498_s19 }
 0xfaf   :  { %v830_v44 = vpop.permute.xlu1 %829 }
 0xfb0   :  { %v832_v3 = vadd.f32 %v830_v44, %v822_v42  ;;  %v799_v46 = vpop.permute.xlu0 %798 }
 0xfb1   :  { %v801_v47 = vadd.f32 %v799_v46, %v791_v45 }
 0xfb2   :  { %1459 = vtanh.f32 %v832_v3 }
 0xfb3   :  { %1461 = vtanh.f32 %v801_v47 }
 0xfbc   :  { %v1460_v48 = vpop.eup %1459 }
 0xfbd   :  { %v1462_v49 = vpop.eup %1461  ;;  %835 = vrot.lane.b32.xlu1 %v1460_v48, %s1497_s2 }
 0xfbe   :  { %804 = vrot.lane.b32.xlu0 %v1462_v49, %s1497_s2 }
0x102f   :  { %v836_v50 = vpop.permute.xlu1 %835 }
0x1030   :  { %v838_v51 = vmul.f32 %v836_v50, %v820_v36  ;;  %v805_v52 = vpop.permute.xlu0 %804 }
0x1031   :  { %v1772_v53 = vmul.f32 %v805_v52, %v789_v38 }
0x1032   :  { %840 = vrot.lane.b32.xlu0 %v838_v51, %s1498_s19 }
0x1033   :  { %843 = vrot.lane.b32.xlu1 %v1772_v53, %s1497_s2 }
0x10a4   :  { %v841_v54 = vpop.permute.xlu0 %840 }
0x10a5   :  { %v844_v55 = vpop.permute.xlu1 %843 }
0x10a6   :  { %v846_v56 = vsel %vm265_vm4, %v841_v54, %v844_v55 }
0x10a7   :  { %v847_v57 = vpack.c.bf16 %v846_v56, %v846_v56 }
0x10a9   :  { %1344 = vmatmul.mubr.msk.bf16.vlgmr.msra.gmra.mrb[12].mxu0 %vm308_vm5, %v847_v57 }
0x10aa   :  { %1066 = vmatpush1.bf16.msra.mxu0 %v1601_v4  ;;  %1097 = vmatprep.mubr.bf16.mxu0 %v1499_v12 }
0x10ab   :  { %1067 = vmatprep.subr.bf16.mxu0 %v1607_v5 }
0x10ae   :  { %1068 = vmatpush1.bf16.msra.mxu0 %v1614_v6 }
0x10af   :  { %1069 = vmatprep.subr.bf16.mxu0 %v1621_v7 }
0x10b2   :  { %1070 = vmatpush1.bf16.msra.mxu0 %v1628_v9 }
0x10b3   :  { %1071 = vmatprep.subr.bf16.mxu0 %v1639_v10 }
0x10b6   :  { %1072 = vmatpush1.bf16.msra.mxu0 %v1644_v11 }
0x117c   :  { %v885_v59 = vpop.f32.mrb[12].mxu0 }
0x117d   :  { %v923_v61 = vadd.f32 %v922_v60, %v885_v59  ;;  %v887_v62 = vpop.f32.mrb[13].mxu0 }
0x117e   :  { %v892_v4 = vadd.f32 %v1669_v22, %v887_v62  ;;  %v889_v63 = vpop.f32.mrb[14].mxu0 }
0x117f   :  { %1463 = vtanh.f32 %v923_v61  ;;  %v890_v12 = vpop.f32.mrb[15].mxu0  ;;  %v924_v7 = vmul.f32 0.5, %v923_v61 }
0x1180   :  { %1465 = vtanh.f32 %v892_v4  ;;  %v893_v9 = vmul.f32 0.5, %v892_v4 }
0x1181   :  { %1467 = vtanh.f32 %v924_v7 }
0x1182   :  { %1469 = vtanh.f32 %v893_v9 }
0x1189   :  { %v1464_v5 = vpop.eup %1463 }
0x118a   :  { %v1466_v6 = vpop.eup %1465  ;;  %931 = vrot.lane.b32.xlu1 %v1464_v5, %s1497_s2 }
0x118b   :  { %900 = vrot.lane.b32.xlu0 %v1466_v6, %s1497_s2  ;;  %v1468_v10 = vpop.eup %1467 }
0x118c   :  { %v1470_v11 = vpop.eup %1469  ;;  %v926_v1 = vmul.f32 0.5, %v1468_v10 }
0x118d   :  { %v895_v2 = vmul.f32 0.5, %v1470_v11 }
0x118e   :  { %v927_v8 = vadd.f32 0.5, %v926_v1 }
0x118f   :  { %v896_v15 = vadd.f32 0.5, %v895_v2 }
0x1190   :  { %v929_v19 = vmul.f32 %v927_v8, %v832_v3 }
0x1191   :  { %v898_v21 = vmul.f32 %v896_v15, %v801_v47 }
0x11fc   :  { %v932_v14 = vpop.permute.xlu1 %931 }
0x11fd   :  { %v934_v16 = vmul.f32 %v932_v14, %v927_v8  ;;  %v901_v17 = vpop.permute.xlu0 %900 }
0x11fe   :  { %v903_v18 = vmul.f32 %v901_v17, %v896_v15 }
0x11ff   :  { %936 = vrot.lane.b32.xlu1 %v934_v16, %s1498_s19 }
0x1200   :  { %905 = vrot.lane.b32.xlu0 %v903_v18, %s1498_s19 }
0x1271   :  { %v937_v20 = vpop.permute.xlu1 %936 }
0x1272   :  { %v939_v23 = vadd.f32 %v937_v20, %v929_v19  ;;  %v906_v24 = vpop.permute.xlu0 %905 }
0x1273   :  { %v908_v25 = vadd.f32 %v906_v24, %v898_v21 }
0x1274   :  { %1471 = vtanh.f32 %v939_v23 }
0x1275   :  { %1473 = vtanh.f32 %v908_v25 }
0x127e   :  { %v1472_v26 = vpop.eup %1471 }
0x127f   :  { %v1474_v27 = vpop.eup %1473  ;;  %942 = vrot.lane.b32.xlu1 %v1472_v26, %s1497_s2 }
0x1280   :  { %911 = vrot.lane.b32.xlu0 %v1474_v27, %s1497_s2 }
0x12f1   :  { %v943_v29 = vpop.permute.xlu1 %942 }
0x12f2   :  { %v945_v30 = vmul.f32 %v943_v29, %v927_v8  ;;  %v912_v31 = vpop.permute.xlu0 %911 }
0x12f3   :  { %v1794_v32 = vmul.f32 %v912_v31, %v896_v15 }
0x12f4   :  { %947 = vrot.lane.b32.xlu0 %v945_v30, %s1498_s19 }
0x12f5   :  { %950 = vrot.lane.b32.xlu1 %v1794_v32, %s1497_s2 }
0x1366   :  { %v948_v33 = vpop.permute.xlu0 %947 }
0x1367   :  { %v951_v35 = vpop.permute.xlu1 %950 }
0x1368   :  { %v953_v36 = vsel %vm265_vm4, %v948_v33, %v951_v35 }
0x1369   :  { %v954_v37 = vpack.c.bf16 %v953_v36, %v953_v36 }
0x136b   :  { %1345 = vmatmul.mubr.msk.bf16.vlgmr.msra.gmra.mrb[12].mxu1 %vm308_vm5, %v954_v37  ;;  %v1395_v37 = vld [vmem:[%s1901_s5] sm:$0xff]  }
0x136c   :  { %1366 = vmatprep.mubr.msk.bf16.mxu1 %vm1494_vm1, %v1493_v0  ;;  %1363 = vmatpush3.bf16.msra.mxu1 %v1395_v37 }
0x136d   :  { %1364 = vmatprep.subr.bf16.mxu1 %v1493_v0 }
0x143e   :  { %v992_v38 = vpop.f32.mrb[12].mxu1 }
0x143f   :  { %v1030_v40 = vadd.f32 %v1029_v39, %v992_v38  ;;  %v994_v41 = vpop.f32.mrb[13].mxu1  ;;  %v1396_v38 = vld [vmem:[%s1901_s5 + $0x8] sm:$0xff]  }
0x1440   :  { %v999_v42 = vadd.f32 %v1669_v22, %v994_v41  ;;  %v996_v44 = vpop.f32.mrb[14].mxu1  ;;  %1365 = vmatpush3.bf16.msra.mxu1 %v1396_v38 }
0x1441   :  { %1475 = vtanh.f32 %v1030_v40  ;;  %v997_v45 = vpop.f32.mrb[15].mxu1  ;;  %v1031_v47 = vmul.f32 0.5, %v1030_v40 }
0x1442   :  { %1477 = vtanh.f32 %v999_v42  ;;  %v1000_v48 = vmul.f32 0.5, %v999_v42 }
0x1443   :  { %1479 = vtanh.f32 %v1031_v47 }
0x1444   :  { %1481 = vtanh.f32 %v1000_v48 }
0x144b   :  { %v1476_v3 = vpop.eup %1475 }
0x144c   :  { %v1478_v46 = vpop.eup %1477  ;;  %1038 = vrot.lane.b32.xlu1 %v1476_v3, %s1497_s2 }
0x144d   :  { %1007 = vrot.lane.b32.xlu0 %v1478_v46, %s1497_s2  ;;  %v1480_v49 = vpop.eup %1479 }
0x144e   :  { %v1482_v50 = vpop.eup %1481  ;;  %v1033_v51 = vmul.f32 0.5, %v1480_v49 }
0x144f   :  { %v1002_v52 = vmul.f32 0.5, %v1482_v50 }
0x1450   :  { %v1034_v54 = vadd.f32 0.5, %v1033_v51 }
0x1451   :  { %v1003_v56 = vadd.f32 0.5, %v1002_v52 }
0x1452   :  { %v1036_v61 = vmul.f32 %v1034_v54, %v939_v23 }
0x1453   :  { %v1005_v4 = vmul.f32 %v1003_v56, %v908_v25 }
0x14be   :  { %v1039_v55 = vpop.permute.xlu1 %1038 }
0x14bf   :  { %v1041_v57 = vmul.f32 %v1039_v55, %v1034_v54  ;;  %v1008_v59 = vpop.permute.xlu0 %1007 }
0x14c0   :  { %v1010_v60 = vmul.f32 %v1008_v59, %v1003_v56 }
0x14c1   :  { %1043 = vrot.lane.b32.xlu1 %v1041_v57, %s1498_s19 }
0x14c2   :  { %1012 = vrot.lane.b32.xlu0 %v1010_v60, %s1498_s19 }
0x1533   :  { %v1044_v62 = vpop.permute.xlu1 %1043 }
0x1534   :  { %v1046_v63 = vadd.f32 %v1044_v62, %v1036_v61  ;;  %v1013_v12 = vpop.permute.xlu0 %1012 }
0x1535   :  { %v1015_v5 = vadd.f32 %v1013_v12, %v1005_v4  ;;  %v1347_v4 = vld [vmem:[%s1902_s6] ss:$0 sm:$0xff] }
0x1536   :  { %1483 = vtanh.f32 %v1046_v63 }
0x1537   :  { %1485 = vtanh.f32 %v1015_v5 }
0x1540   :  { %v1484_v6 = vpop.eup %1483 }
0x1541   :  { %v1486_v7 = vpop.eup %1485  ;;  %1049 = vrot.lane.b32.xlu1 %v1484_v6, %s1497_s2 }
0x1542   :  { %1018 = vrot.lane.b32.xlu0 %v1486_v7, %s1497_s2 }
0x15b3   :  { %v1050_v9 = vpop.permute.xlu1 %1049 }
0x15b4   :  { %v1052_v10 = vmul.f32 %v1050_v9, %v1034_v54  ;;  %v1019_v11 = vpop.permute.xlu0 %1018 }
0x15b5   :  { %v1021_v1 = vmul.f32 %v1019_v11, %v1003_v56 }
0x15b6   :  { %1054 = vrot.lane.b32.xlu0 %v1052_v10, %s1498_s19 }
0x15b7   :  { %1057 = vrot.lane.b32.xlu1 %v1021_v1, %s1497_s2 }
0x1628   :  { %v1055_v2 = vpop.permute.xlu0 %1054 }
0x1629   :  { %v1058_v8 = vpop.permute.xlu1 %1057 }
0x162a   :  { %v1060_v14 = vsel %vm265_vm4, %v1055_v2, %v1058_v8 }
0x162b   :  { %v1061_v15 = vpack.c.bf16 %v1060_v14, %v1060_v14 }
0x162d   :  { %1346 = vmatmul.mubr.msk.bf16.vlgmr.msra.gmra.mrb[16].mxu0 %vm308_vm5, %v1061_v15 }
0x1700   :  { %v1099_v16 = vpop.f32.mrb[16].mxu0 }
0x1701   :  { %1135 = vst [vmem:[#allocation2] sm:$0x3] %v1099_v16  ;;  %v1101_v17 = vpop.f32.mrb[17].mxu0 }
0x1702   :  { %v1106_v18 = vadd.f32 %v1669_v22, %v1101_v17  ;;  %v1103_v19 = vpop.f32.mrb[18].mxu0 }
0x1703   :  { %v1104_v20 = vpop.f32.mrb[19].mxu0 }
0x1704   :  { %1487 = vtanh.f32 %v1106_v18  ;;  %v1107_v23 = vmul.f32 0.5, %v1106_v18 }
0x1706   :  { %1489 = vtanh.f32 %v1107_v23 }
0x170e   :  { %v1488_v21 = vpop.eup %1487 }
0x170f   :  { %1114 = vrot.lane.b32.xlu0 %v1488_v21, %s1497_s2 }
0x1710   :  { %v1490_v24 = vpop.eup %1489 }
0x1711   :  { %v1109_v25 = vmul.f32 0.5, %v1490_v24 }
0x1713   :  { %v1110_v26 = vadd.f32 0.5, %v1109_v25 }
0x1715   :  { %v1112_v22 = vmul.f32 %v1110_v26, %v1015_v5 }
0x1781   :  { %v1115_v27 = vpop.permute.xlu0 %1114 }
0x1782   :  { %v1117_v29 = vmul.f32 %v1115_v27, %v1110_v26 }
0x1784   :  { %1119 = vrot.lane.b32.xlu1 %v1117_v29, %s1498_s19 }
0x1788   :  { %381 = vrot.lane.b32.xlu1 %v1680_v58, %s1498_s19 }
0x178c   :  { %595 = vrot.lane.b32.xlu1 %v1726_v28, %s1498_s19 }
0x1790   :  { %809 = vrot.lane.b32.xlu1 %v1772_v53, %s1498_s19 }
0x1794   :  { %1023 = vrot.lane.b32.xlu1 %v1021_v1, %s1498_s19 }
0x1798   :  { %1137 = vrot.lane.b32.xlu1 %v1046_v63, %s1500_s4 }
0x17f6   :  { %v1120_v30 = vpop.permute.xlu1 %1119 }
0x17f7   :  { %v1122_v31 = vadd.f32 %v1120_v30, %v1112_v22 }
0x17f9   :  { %1491 = vtanh.f32 %v1122_v31 }
0x17fa   :  { %v382_v33 = vpop.permute.xlu1 %381 }
0x17fb   :  { %385 = vst.msk [vmem:[#allocation7] sm:$0x3] %vm32_vm3, %v382_v33 }
0x17fe   :  { %v596_v35 = vpop.permute.xlu1 %595 }
0x17ff   :  { %599 = vst.msk [vmem:[#allocation7 + $0x4] sm:$0x3] %vm32_vm3, %v596_v35 }
0x1802   :  { %v810_v58 = vpop.permute.xlu1 %809  ;;  %v1147_v47 = vld [vmem:[#allocation7] sm:$0x3] }
0x1803   :  { %v1492_v28 = vpop.eup %1491  ;;  %813 = vst.msk [vmem:[#allocation7 + $0x8] sm:$0x3] %vm32_vm3, %v810_v58 }
0x1804   :  { %1125 = vrot.lane.b32.xlu0 %v1492_v28, %s1497_s2 }
0x1806   :  { %v1024_v53 = vpop.permute.xlu1 %1023  ;;  %v1149_v45 = vld [vmem:[#allocation7 + $0x4] sm:$0x3] }
0x1807   :  { %1027 = vst.msk [vmem:[#allocation7 + $0xc] sm:$0x3] %vm32_vm3, %v1024_v53 }
0x1808   :  { %488 = vrot.lane.b32.xlu0 %v1703_v43, %s1498_s19 }
0x180a   :  { %v1138_v36 = vpop.permute.xlu1 %1137  ;;  %v1151_v48 = vld [vmem:[#allocation7 + $0x8] sm:$0x3] }
0x180b   :  { %1140 = vst.msk [vmem:[#allocation3] sm:$0x3] %vm32_vm3, %v1138_v36 }
0x180c   :  { %702 = vrot.lane.b32.xlu0 %v1749_v13, %s1498_s19 }
0x180e   :  { %v1153_v51 = vld [vmem:[#allocation7 + $0xc] sm:$0x3] }
0x1810   :  { %916 = vrot.lane.b32.xlu0 %v1794_v32, %s1498_s19 }
0x1876   :  { %v1126_v43 = vpop.permute.xlu0 %1125 }
0x1877   :  { %v1128_v39 = vmul.f32 %v1126_v43, %v1110_v26 }
0x1879   :  { %1130 = vrot.lane.b32.xlu0 %v1128_v39, %s1498_s19 }
0x187a   :  { %v489_v13 = vpop.permute.xlu0 %488 }
0x187b   :  { %492 = vst.msk [vmem:[#allocation7 + $0x2] sm:$0x3] %vm32_vm3, %v489_v13 }
0x187d   :  { %1143 = vrot.lane.b32.xlu0 %v1122_v31, %s1500_s4 }
0x187e   :  { %v703_v32 = vpop.permute.xlu0 %702 }
0x187f   :  { %706 = vst.msk [vmem:[#allocation7 + $0x6] sm:$0x3] %vm32_vm3, %v703_v32 }
0x1882   :  { %v917_v40 = vpop.permute.xlu0 %916  ;;  %v1148_v44 = vld [vmem:[#allocation7 + $0x2] sm:$0x3] }
0x1883   :  { %920 = vst.msk [vmem:[#allocation7 + $0xa] sm:$0x3] %vm32_vm3, %v917_v40  ;;  %v1163_v49 = vcombine.low %v1147_v47, %v1148_v44 }
0x1885   :  { %v1171_v56 = vrot.slane %v1163_v49, %v1581_v34 }
0x1886   :  { %v1150_v0 = vld [vmem:[#allocation7 + $0x6] sm:$0x3] }
0x1887   :  { %v1164_v46 = vcombine.low %v1149_v45, %v1150_v0 }
0x1889   :  { %v1178_v54 = vrot.slane %v1164_v46, %v1581_v34 }
0x188a   :  { %v1152_v3 = vld [vmem:[#allocation7 + $0xa] sm:$0x3] }
0x188b   :  { %v1180_v50 = vcombine.low %v1151_v48, %v1152_v3  ;;  %v1179_v60 = vcombine.low %v1171_v56, %v1178_v54 }
0x188d   :  { %v1188_v57 = vrot.slane %v1180_v50, %v1581_v34 }
0x18eb   :  { %v1131_v41 = vpop.permute.xlu0 %1130 }
0x18ec   :  { %1134 = vst.msk [vmem:[#allocation7 + $0xe] sm:$0x3] %vm32_vm3, %v1131_v41  ;;  %1141 = vst.msk [vmem:[#allocation4] sm:$0x3] %vm32_vm3, %v1131_v41 }
0x18ef   :  { %v1144_v42 = vpop.permute.xlu0 %1143 }
0x18f0   :  { %1146 = vst.msk [vmem:[#allocation5] sm:$0x3] %vm32_vm3, %v1144_v42 }
0x18f3   :  { %v1154_v52 = vld [vmem:[#allocation7 + $0xe] sm:$0x3] }
0x18f4   :  { %v1181_v55 = vcombine.low %v1153_v51, %v1154_v52 }
0x18f6   :  { %v1195_v59 = vrot.slane %v1181_v55, %v1581_v34 }
0x18f8   :  { %v1196_v61 = vcombine.low %v1188_v57, %v1195_v59 }
0x18fa   :  { %v1199_v62 = vpack.c.bf16 %v1196_v61, %v1179_v60 }
0x18fc   :  { %1367 = vmatmul.mubr.msk.bf16.vlgmr.msra.gmra.mrb[16].mxu1 %vm265_vm4, %v1199_v62 }
0x19cf   :  { %v1260_v63 = vpop.f32.mrb[16].mxu1 }
0x19d0   :  { %v1261_v12 = vadd.f32 %v1347_v4, %v1260_v63  ;;  %v1368_v5 = vpop.f32.mrb[17].mxu1 }
0x19d1   :  { %v1263_v6 = vpop.f32.mrb[18].mxu1 }
0x19d2   :  { %v1269_v7 = vcombine.high %v1261_v12, %v1261_v12  ;;  %v1276_v9 = vrot.slane %v1261_v12, %v1581_v34  ;;  %v1264_v10 = vadd.f32 %v1347_v4, %v1263_v6  ;;  %v1369_v11 = vpop.f32.mrb[19].mxu1 }
0x19d4   :  { %v1283_v1 = vrot.slane %v1269_v7, %v1581_v34  ;;  %v1284_v2 = vcombine.high %v1276_v9, %v1276_v9  ;;  %1312 = vst.msk [vmem:[%s1903_s7] sm:$0x3] %vm1311_vm6, %v1276_v9  ;;  %v1286_v8 = vcombine.high %v1264_v10, %v1264_v10  ;;  %v1293_v14 = vrot.slane %v1264_v10, %v1581_v34 }
0x19d6   :  { %v1285_v15 = vcombine.high %v1283_v1, %v1283_v1  ;;  %1313 = vst.msk [vmem:[%s1903_s7 + $0x2] sm:$0x3] %vm1311_vm6, %v1284_v2  ;;  %1314 = vst.msk [vmem:[%s1903_s7 + $0x4] sm:$0x3] %vm1311_vm6, %v1283_v1  ;;  %v1300_v16 = vrot.slane %v1286_v8, %v1581_v34  ;;  %v1301_v17 = vcombine.high %v1293_v14, %v1293_v14 }
0x19d7   :  { %1316 = vst.msk [vmem:[%s1903_s7 + $0x8] sm:$0x3] %vm1311_vm6, %v1293_v14 }
0x19d8   :  { %1315 = vst.msk [vmem:[%s1903_s7 + $0x6] sm:$0x3] %vm1311_vm6, %v1285_v15  ;;  %v1302_v18 = vcombine.high %v1300_v16, %v1300_v16  ;;  %1317 = vst.msk [vmem:[%s1903_s7 + $0xa] sm:$0x3] %vm1311_vm6, %v1301_v17 }
0x19d9   :  { %1318 = vst.msk [vmem:[%s1903_s7 + $0xc] sm:$0x3] %vm1311_vm6, %v1300_v16 }
0x19da   :  { %1319 = vst.msk [vmem:[%s1903_s7 + $0xe] sm:$0x3] %vm1311_vm6, %v1302_v18 }

</bundles_post_ra>
